<compile_context>
chip_gen: v5e
topology: v5e:2x2
jax: 0.10.0
libtpu: 0.0.40
codegen_flags: <defaults>
</compile_context>

<pallas_src>
import jax
import jax.numpy as jnp
from jax import lax
from jax.experimental import pallas as pl
from jax.experimental.pallas import tpu as pltpu


# --------------------------------------------------------------------------
# Kernels
# --------------------------------------------------------------------------
def _deg_kernel(adj_ref, dsq_ref, acc_ref):
    """dsq[i] = rsqrt(rowsum(adj)[i] + 1)   (the +1 is the self loop)."""
    k = pl.program_id(1)

    @pl.when(k == 0)
    def _():
        acc_ref[...] = jnp.zeros_like(acc_ref)

    # adj tile is bf16 0/1; accumulate exactly in f32.
    acc_ref[...] += jnp.sum(adj_ref[...].astype(jnp.float32), axis=1,
                            keepdims=True)

    @pl.when(k == pl.num_programs(1) - 1)
    def _():
        dsq_ref[...] = lax.rsqrt(acc_ref[...] + 1.0)


def _gcn1_kernel(adj_ref, xc_ref, dc_ref, xr_ref, dr_ref, w1_ref, b1_ref,
                 h1_ref, acc_ref):
    """h1 = relu((A_norm @ x) @ W1 + b1)  (== relu(A_norm @ (x@W1) + b1))."""
    k = pl.program_id(1)

    @pl.when(k == 0)
    def _():
        acc_ref[...] = jnp.zeros_like(acc_ref)

    # Propagate the *raw* features (width C) -- cheaper than propagating x@W1
    # (width 2C) and mathematically identical by linearity.
    xs = (dc_ref[...] * xc_ref[...]).astype(jnp.bfloat16)          # (tk, C)
    acc_ref[...] += jnp.dot(adj_ref[...], xs,                      # bf16 MXU
                            preferred_element_type=jnp.float32)    # (tr, C)

    @pl.when(k == pl.num_programs(1) - 1)
    def _():
        dsq = dr_ref[...]                                          # (tr, 1)
        # dsq * (adj @ dsq*x)  +  dsq^2 * x   == (A_norm @ x) rows
        prop = dsq * acc_ref[...] + (dsq * dsq) * xr_ref[...]      # (tr, C)
        h = jnp.dot(prop, w1_ref[...],
                    preferred_element_type=jnp.float32) + b1_ref[...]
        h1_ref[...] = jnp.maximum(h, 0.0)
        # Dropout: identity in eval mode.


def _gcn2_cls_kernel(adj_ref, hc_ref, dc_ref, hr_ref, dr_ref, w2_ref, b2_ref,
                     wss_ref, z_ref, acc_ref):
    """z = relu(A_norm @ (h1 @ W2) + b2) @ Wss_padded  (lane-dense output)."""
    k = pl.program_id(1)

    @pl.when(k == 0)
    def _():
        acc_ref[...] = jnp.zeros_like(acc_ref)

    # Recompute the tiny feature matmul per K tile (O(tk*2C*C), negligible)
    # instead of writing H1@W2 to HBM between sweeps.
    g = jnp.dot(hc_ref[...], w2_ref[...],
                preferred_element_type=jnp.float32)                # (tk, C)
    g = (dc_ref[...] * g).astype(jnp.bfloat16)
    acc_ref[...] += jnp.dot(adj_ref[...], g,
                            preferred_element_type=jnp.float32)    # (tr, C)

    @pl.when(k == pl.num_programs(1) - 1)
    def _():
        dsq = dr_ref[...]
        g_self = jnp.dot(hr_ref[...], w2_ref[...],
                         preferred_element_type=jnp.float32)       # (tr, C)
        h2 = dsq * acc_ref[...] + (dsq * dsq) * g_self + b2_ref[...]
        h2 = jnp.maximum(h2, 0.0)
        # Dropout: identity in eval mode.
        # Wss is zero-padded to 128 lanes -> unmasked lane-dense vst.
        z_ref[...] = jnp.dot(h2, wss_ref[...],
                             preferred_element_type=jnp.float32)


# --------------------------------------------------------------------------
# Wrapper
# --------------------------------------------------------------------------
def _pick_tile(n, cap, mult):
    """Largest tile <= cap that divides n and is a multiple of `mult`,
    falling back to the full extent (always legal as a block dim)."""
    if n <= cap:
        return n
    for t in range(min(cap, n), 0, -1):
        if t % mult == 0 and n % t == 0:
            return t
    return n


def graphpart_forward(adj, x, params, *, row_tile=256, col_tile=512):
    """Returns (z, z_ss) exactly as the PyTorch module's forward (eval mode)."""
    n, c = x.shape
    hidden = params["w1"].shape[1]
    num_parts = params["wss"].shape[1]
    assert params["w1"].shape == (c, hidden)
    assert params["w2"].shape == (hidden, c)

    # adj holds exactly 0/1 -> bf16 is lossless; halves HBM/VMEM traffic of the
    # only N^2-sized operand and runs the MXU at its narrow-precision rate.
    adj_bf16 = adj.astype(jnp.bfloat16)
    x = x.astype(jnp.float32)

    # Pad classifier weights to a lane-dense (>=128-wide) output slab.
    pad_to = max(128, ((num_parts + 127) // 128) * 128)
    wss_pad = jnp.zeros((c, pad_to), jnp.float32).at[:, :num_parts].set(
        params["wss"].astype(jnp.float32))

    tr = _pick_tile(n, row_tile, 8)     # row tile (sublane-aligned)
    tk = _pick_tile(n, col_tile, 128)   # K/column tile (lane-aligned)
    grid = (n // tr, n // tk)

    cp = pltpu.CompilerParams(
        dimension_semantics=("parallel", "arbitrary"),
        vmem_limit_bytes=32 * 1024 * 1024,   # safe on v5e/v6e/v7x, >> tile needs
    )

    adj_spec = pl.BlockSpec((tr, tk), lambda i, k: (i, k))
    col_vec = pl.BlockSpec((tk, 1), lambda i, k: (k, 0))
    row_vec = pl.BlockSpec((tr, 1), lambda i, k: (i, 0))

    # --- pass 0: symmetric-normalization scales dsq = rsqrt(deg) ------------
    dsq = pl.pallas_call(
        _deg_kernel,
        out_shape=jax.ShapeDtypeStruct((n, 1), jnp.float32),
        grid=grid,
        in_specs=[adj_spec],
        out_specs=row_vec,
        scratch_shapes=[pltpu.VMEM((tr, 1), jnp.float32)],
        compiler_params=cp,
        cost_estimate=pl.CostEstimate(flops=n * n, transcendentals=n,
                                      bytes_accessed=2 * n * n + 4 * n),
    )(adj_bf16)

    # --- GCN layer 1 ---------------------------------------------------------
    h1 = pl.pallas_call(
        _gcn1_kernel,
        out_shape=jax.ShapeDtypeStruct((n, hidden), jnp.float32),
        grid=grid,
        in_specs=[
            adj_spec,                                        # adj (tr, tk)
            pl.BlockSpec((tk, c), lambda i, k: (k, 0)),      # x columns
            col_vec,                                         # dsq columns
            pl.BlockSpec((tr, c), lambda i, k: (i, 0)),      # x rows (self loop)
            row_vec,                                         # dsq rows
            pl.BlockSpec((c, hidden), lambda i, k: (0, 0)),  # W1
            pl.BlockSpec((1, hidden), lambda i, k: (0, 0)),  # b1
        ],
        out_specs=pl.BlockSpec((tr, hidden), lambda i, k: (i, 0)),
        scratch_shapes=[pltpu.VMEM((tr, c), jnp.float32)],
        compiler_params=cp,
        cost_estimate=pl.CostEstimate(
            flops=2 * n * n * c + 2 * n * c * hidden, transcendentals=0,
            bytes_accessed=2 * n * n + 4 * n * (2 * c + hidden + 2)),
    )(adj_bf16, x, dsq, x, dsq,
      params["w1"].astype(jnp.float32), params["b1"].astype(jnp.float32))

    # --- GCN layer 2 + ss_classifier -----------------------------------------
    z_pad = pl.pallas_call(
        _gcn2_cls_kernel,
        out_shape=jax.ShapeDtypeStruct((n, pad_to), jnp.float32),
        grid=grid,
        in_specs=[
            adj_spec,                                        # adj (tr, tk)
            pl.BlockSpec((tk, hidden), lambda i, k: (k, 0)), # h1 columns
            col_vec,                                         # dsq columns
            pl.BlockSpec((tr, hidden), lambda i, k: (i, 0)), # h1 rows
            row_vec,                                         # dsq rows
            pl.BlockSpec((hidden, c), lambda i, k: (0, 0)),  # W2
            pl.BlockSpec((1, c), lambda i, k: (0, 0)),       # b2
            pl.BlockSpec((c, pad_to), lambda i, k: (0, 0)),  # Wss (padded)
        ],
        out_specs=pl.BlockSpec((tr, pad_to), lambda i, k: (i, 0)),
        scratch_shapes=[pltpu.VMEM((tr, c), jnp.float32)],
        compiler_params=cp,
        cost_estimate=pl.CostEstimate(
            flops=2 * n * n * c + 2 * n * hidden * c + 2 * n * c * pad_to,
            transcendentals=0,
            bytes_accessed=2 * n * n + 4 * n * (hidden + pad_to + 2)),
    )(adj_bf16, h1, dsq, h1, dsq,
      params["w2"].astype(jnp.float32), params["b2"].astype(jnp.float32),
      wss_pad)

    z = z_pad[:, :num_parts]
    # Both branches of the module run the same convs + the same ss_classifier;
    # with dropout in eval mode z_ss == z.
    # TODO(synk): if training-mode dropout is ever needed, the two branches
    # must be computed with independent dropout masks instead of aliased.
    return z, z


def init_params(key, in_channels, num_classes, num_parts):
    hidden = 2 * in_channels
    k1, k2, k3, k4 = jax.random.split(key, 4)
    glorot = lambda k, fi, fo: (jax.random.normal(k, (fi, fo), jnp.float32)
                                * jnp.sqrt(2.0 / (fi + fo)))
    return {
        "w1": glorot(k1, in_channels, hidden),
        "b1": jnp.zeros((1, hidden), jnp.float32),
        "w2": glorot(k2, hidden, in_channels),
        "b2": jnp.zeros((1, in_channels), jnp.float32),
        "wss": glorot(k3, in_channels, num_parts),
        # s_classifier exists in the module but is never used in forward():
        "ws": glorot(k4, in_channels, num_classes),
    }


def _reference(adj, x, params):
    """Pure-JAX reference (f32, highest matmul precision)."""
    n = adj.shape[0]
    hi = lax.Precision.HIGHEST
    a_hat = adj + jnp.eye(n, dtype=jnp.float32)
    deg = a_hat.sum(axis=1, keepdims=True)
    dsq = lax.rsqrt(deg)
    a_norm = dsq * a_hat * dsq.T
    h = jnp.dot(x, params["w1"], precision=hi)
    h = jnp.maximum(jnp.dot(a_norm, h, precision=hi) + params["b1"], 0.0)
    h = jnp.dot(h, params["w2"], precision=hi)
    h = jnp.maximum(jnp.dot(a_norm, h, precision=hi) + params["b2"], 0.0)
    return jnp.dot(h, params["wss"], precision=hi)


if __name__ == "__main__":
    # Small graph: N=1024 nodes (grid = 4x2 tiles of 256x512), in_channels=32,
    # num_classes=7, num_parts=8, dropout identity (eval mode).
    N, C, NUM_CLASSES, NUM_PARTS = 1024, 32, 7, 8

    key = jax.random.PRNGKey(0)
    k_adj, k_x, k_p = jax.random.split(key, 3)

    # Symmetric 0/1 adjacency without self loops (GCNConv adds them).
    a = (jax.random.uniform(k_adj, (N, N)) < 0.02).astype(jnp.float32)
    adj = jnp.maximum(a, a.T)
    adj = adj * (1.0 - jnp.eye(N, dtype=jnp.float32))

    x = jax.random.normal(k_x, (N, C), jnp.float32)
    params = init_params(k_p, C, NUM_CLASSES, NUM_PARTS)

    z, z_ss = graphpart_forward(adj, x, params)
    jax.block_until_ready((z, z_ss))
    assert z.shape == (N, NUM_PARTS) and z_ss.shape == (N, NUM_PARTS)

    # Correctness vs pure-JAX reference (bf16 propagation -> loose tolerance).
    z_ref = _reference(adj, x, params)
    scale = float(jnp.max(jnp.abs(z_ref)))
    err = float(jnp.max(jnp.abs(z - z_ref)))
    assert err <= 3e-2 * scale + 1e-5, f"max err {err} vs scale {scale}"

    print("KERNEL_OK")
</pallas_src>

<mosaic_0001>
module attributes {stable_mosaic.version = 11 : i64} {
  func.func @_deg_kernel(%arg0: i32, %arg1: i32, %arg2: memref<256x512xbf16, #tpu.memory_space<vmem>>, %arg3: memref<256x1xf32, #tpu.memory_space<vmem>>, %arg4: memref<256x1xf32, #tpu.memory_space<vmem>>) attributes {dimension_semantics = [#tpu.dimension_semantics<parallel>, #tpu.dimension_semantics<arbitrary>], iteration_bounds = array<i64: 4, 2>, scalar_prefetch = 0 : i64, scratch_operands = 1 : i64, tpu.core_type = #tpu.core_type<tc>, window_params = [{transform_indices = @transform_0, window_bounds = array<i64: 256, 512>}, {transform_indices = @transform_1, window_bounds = array<i64: 256, 1>}]} {
    %c0_i32 = arith.constant 0 : i32
    %0 = arith.cmpi eq, %arg1, %c0_i32 : i32
    %1 = arith.extui %0 : i1 to i32
    %c0_i32_0 = arith.constant 0 : i32
    %2 = arith.cmpi ne, %1, %c0_i32_0 : i32
    scf.if %2 {
      %cst_7 = arith.constant 0.000000e+00 : f32
      %13 = vector.broadcast %cst_7 : f32 to vector<256x1xf32>
      %c0_8 = arith.constant 0 : index
      %c0_9 = arith.constant 0 : index
      %14 = vector.load %arg4[%c0_8, %c0_9] : memref<256x1xf32, #tpu.memory_space<vmem>>, vector<256x1xf32>
      tpu.vector_store %arg4[%c0_8, %c0_9], %13 {strides = array<i32>} : memref<256x1xf32, #tpu.memory_space<vmem>>, vector<256x1xf32>,
    } else {
    }
    %c0 = arith.constant 0 : index
    %c0_1 = arith.constant 0 : index
    %3 = vector.load %arg4[%c0, %c0_1] : memref<256x1xf32, #tpu.memory_space<vmem>>, vector<256x1xf32>
    %c0_2 = arith.constant 0 : index
    %c0_3 = arith.constant 0 : index
    %4 = vector.load %arg2[%c0_2, %c0_3] : memref<256x512xbf16, #tpu.memory_space<vmem>>, vector<256x512xbf16>
    %5 = arith.extf %4 : vector<256x512xbf16> to vector<256x512xf32>
    %cst = arith.constant dense<0.000000e+00> : vector<256xf32>
    %6 = vector.multi_reduction <add>, %5, %cst [1] : vector<256x512xf32> to vector<256xf32>
    %7 = vector.shape_cast %6 : vector<256xf32> to vector<256x1xf32>
    %8 = arith.addf %3, %7 : vector<256x1xf32>
    %c0_4 = arith.constant 0 : index
    %c0_5 = arith.constant 0 : index
    %9 = vector.load %arg4[%c0_4, %c0_5] : memref<256x1xf32, #tpu.memory_space<vmem>>, vector<256x1xf32>
    tpu.vector_store %arg4[%c0_4, %c0_5], %8 {strides = array<i32>} : memref<256x1xf32, #tpu.memory_space<vmem>>, vector<256x1xf32>,
    %c1_i32 = arith.constant 1 : i32
    %10 = arith.cmpi eq, %arg1, %c1_i32 : i32
    %11 = arith.extui %10 : i1 to i32
    %c0_i32_6 = arith.constant 0 : i32
    %12 = arith.cmpi ne, %11, %c0_i32_6 : i32
    scf.if %12 {
      %c0_7 = arith.constant 0 : index
      %c0_8 = arith.constant 0 : index
      %13 = vector.load %arg4[%c0_7, %c0_8] : memref<256x1xf32, #tpu.memory_space<vmem>>, vector<256x1xf32>
      %cst_9 = arith.constant 1.000000e+00 : f32
      %14 = vector.broadcast %cst_9 : f32 to vector<256x1xf32>
      %15 = arith.addf %13, %14 : vector<256x1xf32>
      %16 = math.rsqrt %15 : vector<256x1xf32>
      %c0_10 = arith.constant 0 : index
      %c0_11 = arith.constant 0 : index
      %17 = vector.load %arg3[%c0_10, %c0_11] : memref<256x1xf32, #tpu.memory_space<vmem>>, vector<256x1xf32>
      tpu.vector_store %arg3[%c0_10, %c0_11], %16 {strides = array<i32>} : memref<256x1xf32, #tpu.memory_space<vmem>>, vector<256x1xf32>,
    } else {
    }
    return
  }
  func.func @transform_0(%arg0: i32, %arg1: i32) -> (i32, i32) {
    %c0_i32 = arith.constant 0 : i32
    return %arg0, %arg1 : i32, i32
  }
  func.func @transform_1(%arg0: i32, %arg1: i32) -> (i32, i32) {
    %c0_i32 = arith.constant 0 : i32
    %c0_i32_0 = arith.constant 0 : i32
    return %arg0, %c0_i32 : i32, i32
  }
}

</mosaic_0001>

<bundles_post_ra>
// kernel: tpu_custom_call.1
= control target key start
LH: loop header
LB: loop body
LE: loop exit
PB: predicated region body
PF: predicated region fallthrough
CT: control target
= control target key end

     0   :  { %6 = vsyncpa [#allocation4], 0  ;;  %s2376_s0 = inlined_call_operand.hbm [shape: bf16[1024,1024], index: 0, kind: input, shape index: {}]   ;;  %s2377_s1 = inlined_call_operand.vmem [shape: f32[1024,1], index: 1, kind: output, shape index: {}]  }
   0x1   :  { %8 = vsyncpa [#allocation4 + $0x1], 0  ;;  %s1416_s6 = smov 0   ;;  %s1418_s7 = smov 0  }
   0x2   :  { %s1420_s8 = smov 0   ;;  %s1422_s9 = smov 0  }
   0x3   :  { %s1424_s10 = smov 0   ;;  %s1426_s11 = smov 0  }
   0x4   :  { %s1428_s12 = smov 0   ;;  %s1430_s13 = smov 0  }
   0x5 LB: > { %s1147_s14 = sadd.s32 4294967295, %s1400_s13   ;;  %s23_s15 = sadd.s32 1, %s1392_s11  ;;  %s1400_s13 = sphi %s1430_s13, %s14_s13   ;;  %s1396_s12 = sphi %s1428_s12, %s2448_s12   ;;  %s1392_s11 = sphi %s1426_s11, %s2447_s11   ;;  %s1388_s10 = sphi %s1424_s10, %s2446_s10   ;;  %s1384_s9 = sphi %s1422_s9, %s2445_s9   ;;  %s1380_s8 = sphi %s1420_s8, %s2444_s8   ;;  %s1376_s7 = sphi %s1418_s7, %s2443_s7   ;;  %s1372_s6 = sphi %s1416_s6, %s2442_s6  }
   0x6   : > { %p24_p0 = scmp.ge.s32.totalorder %s23_s15, 2  ;;  %s26_s16 = sadd.s32 1, %s1396_s12 }
   0x7   : > { %s35_s17 = sadd.s32 1, %s1380_s8  ;;  %p42_p1 = scmp.ne.s32.totalorder %s1380_s8, %s1376_s7 }
   0x8   : > { %s2450_s15 = smov (%p24_p0, %s23_s15), 0  ;;  %s2452_s16 = smov (!%p24_p0, %s26_s16), %s1396_s12 }
   0x9   : > { %s31_s18 = ssub.s32 %s1392_s11, %s2450_s15  ;;  %p43_p2 = scmp.eq.s32.totalorder %s1400_s13, 0 }
   0xa   : > { %p28_p3 = scmp.ge.s32.totalorder %s2452_s16, 4  ;;  %p48_p4 = scmp.ne.s32.totalorder %s1376_s7, %s1372_s6 }
   0xb   : > { %p1467_p5 = por %p43_p2, %p42_p1  ;;  %p49_p6 = scmp.eq.s32.totalorder %s1147_s14, 0 }
   0xc   : > { %s2454_s16 = smov (%p28_p3, %s2452_s16), 0  ;;  %p1171_p8 = scmp.lt.s32.totalorder %s1400_s13, 8 }
   0xd   : > { %p1473_p7 = por %p49_p6, %p48_p4  ;;  %s30_s21 = ssub.s32 %s1396_s12, %s2454_s16 }
   0xe   : > { %s32_s22 = sor.u32 %s31_s18, %s30_s21  ;;  %s98_s23 = sand.u32 1, %s1380_s8  }
   0xf   : > { %p33_p9 = scmp.eq.s32.totalorder %s32_s22, 0  ;;  %s1151_s24 = sshll.u32 %s98_s23, 9 }
  0x10   : > { %s1153_s25 = sshll.u32 %s1392_s11, 2  ;;  %s1164_s27 = sshll.u32 %s1396_s12, 8 }
  0x11   : > { %s1483_s26 = scalar_select %p33_p9, %s1380_s8, %s35_s17  }
  0x12   : > { %s108_s28 = sadd.s32 %s1164_s27, %s1153_s25  ;;  %s102_s29 = scalar_lea.vmem [#allocation3], %s1151_s24 }
  0x13   : > { %s113_s30 = sshll.u32 %s102_s29, 4  ;;  %s1155_s2 = sshll.u32 %s108_s28, 2  ;;  %s114_s30 = int_to_ptr.vmem [resolvable:$true] %s113_s30 }
  0x14   : > { %s110_s5 = scalar_lea.hbm %s2376_s0, %s1155_s2  ;;  %p1168_p10 = pnand %p1171_p8, %p1467_p5 }
  0x15   : > { %s111_s6 = sshll.u32 %s110_s5, 4  ;;  %s99_s14 = scalar_lea.sflag [#allocation4], %s98_s23  ;;  %s112_s6 = int_to_ptr.hbm [resolvable:$true] %s111_s6 }
  0x16   : > { %s1402_s17 = smov 512   ;;  %s1403_s18 = smov 256  }
  0x17   : > { %s1404_s21 = smov 16   ;;  %p1156_p11 = scmp.ge.s32.totalorder %s1400_s13, 1 }
  0x18   : > { %1170 = dma.hbm_to_vmem [thread:$0]  (!%p1168_p10), %s112_s6, 8192, %s114_s30, %s99_s14, %s1402_s17, %s1403_s18, %s1404_s21  }
  0x19   : > { %p121_p12 = scmp.lt.s32.totalorder %s1400_s13, 9 }
  0x1b   : > { %p122_p13 = pnand %p1156_p11, %p121_p12 }
  0x1c   : > { %s127_s22 = sand.u32 (!%p122_p13), 1, %s1376_s7  }
  0x1d   : > { %125 = sbr.rel (%p122_p13) target bundleno = 382 (0x17e), region = 24  ;;  %s1157_s24 = sshll.u32 (!%p122_p13), %s127_s22, 9 }
  0x1e   : > { %s128_s25 = scalar_lea.sflag (!%p122_p13), [#allocation4], %s127_s22  ;;  %s1496_s27 = scalar_lea.vmem (!%p122_p13), [#allocation3], %s1157_s24 }
  0x22   : > { %1367 = dma.done.wait (%p1473_p7), %s128_s25, 8192  }
  0x23   : > { %1369 = vsyncadd (%p1473_p7), %s128_s25, 4294959104  ;;  %s1158_s19 = sshll.u32 %s1388_s10, 5  ;;  %p1160_p1 = scmp.ne.s32.totalorder %s1384_s9, 0 }
  0x24   : > { %p154_p0 = scmp.lt.s32.totalorder %s1158_s19, 127 }
  0x25   : > { %162 = sbr.rel (%p1160_p1) target bundleno = 75 (0x4b), region = 32 }
  0x26   : > { %s2456_s19 = smov (!%p154_p0, %s1158_s19), 127 }
  0x27   : > { %s1159_s23 = sshll.u32 %s2456_s19, 3 }
  0x28   : > { %s1506_s30 = scalar_lea.vmem %s2377_s1, %s1159_s23 }
  0x2a   : > { %vm163_vm0 = vcmask 7168   ;;  %v1405_v0 = vmov 0.0  }
  0x2b   : > { %164 = vst.msk [vmem:[#allocation2] sm:$0xff] %vm163_vm0, %v1405_v0 }
  0x2c   : > { %165 = vst.msk [vmem:[#allocation2 + $0x8] sm:$0xff] %vm163_vm0, %v1405_v0 }
  0x2d   : > { %166 = vst.msk [vmem:[#allocation2 + $0x10] sm:$0xff] %vm163_vm0, %v1405_v0 }
  0x2e   : > { %167 = vst.msk [vmem:[#allocation2 + $0x18] sm:$0xff] %vm163_vm0, %v1405_v0 }
  0x2f   : > { %168 = vst.msk [vmem:[#allocation2 + $0x20] sm:$0xff] %vm163_vm0, %v1405_v0 }
  0x30   : > { %169 = vst.msk [vmem:[#allocation2 + $0x28] sm:$0xff] %vm163_vm0, %v1405_v0 }
  0x31   : > { %170 = vst.msk [vmem:[#allocation2 + $0x30] sm:$0xff] %vm163_vm0, %v1405_v0 }
  0x32   : > { %171 = vst.msk [vmem:[#allocation2 + $0x38] sm:$0xff] %vm163_vm0, %v1405_v0 }
  0x33   : > { %172 = vst.msk [vmem:[#allocation2 + $0x40] sm:$0xff] %vm163_vm0, %v1405_v0 }
  0x34   : > { %173 = vst.msk [vmem:[#allocation2 + $0x48] sm:$0xff] %vm163_vm0, %v1405_v0 }
  0x35   : > { %174 = vst.msk [vmem:[#allocation2 + $0x50] sm:$0xff] %vm163_vm0, %v1405_v0 }
  0x36   : > { %175 = vst.msk [vmem:[#allocation2 + $0x58] sm:$0xff] %vm163_vm0, %v1405_v0 }
  0x37   : > { %176 = vst.msk [vmem:[#allocation2 + $0x60] sm:$0xff] %vm163_vm0, %v1405_v0 }
  0x38   : > { %177 = vst.msk [vmem:[#allocation2 + $0x68] sm:$0xff] %vm163_vm0, %v1405_v0 }
  0x39   : > { %178 = vst.msk [vmem:[#allocation2 + $0x70] sm:$0xff] %vm163_vm0, %v1405_v0 }
  0x3a   : > { %179 = vst.msk [vmem:[#allocation2 + $0x78] sm:$0xff] %vm163_vm0, %v1405_v0 }
  0x3b   : > { %180 = vst.msk [vmem:[#allocation2 + $0x80] sm:$0xff] %vm163_vm0, %v1405_v0 }
  0x3c   : > { %181 = vst.msk [vmem:[#allocation2 + $0x88] sm:$0xff] %vm163_vm0, %v1405_v0 }
  0x3d   : > { %182 = vst.msk [vmem:[#allocation2 + $0x90] sm:$0xff] %vm163_vm0, %v1405_v0 }
  0x3e   : > { %183 = vst.msk [vmem:[#allocation2 + $0x98] sm:$0xff] %vm163_vm0, %v1405_v0 }
  0x3f   : > { %184 = vst.msk [vmem:[#allocation2 + $0xa0] sm:$0xff] %vm163_vm0, %v1405_v0 }
  0x40   : > { %185 = vst.msk [vmem:[#allocation2 + $0xa8] sm:$0xff] %vm163_vm0, %v1405_v0 }
  0x41   : > { %186 = vst.msk [vmem:[#allocation2 + $0xb0] sm:$0xff] %vm163_vm0, %v1405_v0 }
  0x42   : > { %187 = vst.msk [vmem:[#allocation2 + $0xb8] sm:$0xff] %vm163_vm0, %v1405_v0 }
  0x43   : > { %188 = vst.msk [vmem:[#allocation2 + $0xc0] sm:$0xff] %vm163_vm0, %v1405_v0 }
  0x44   : > { %189 = vst.msk [vmem:[#allocation2 + $0xc8] sm:$0xff] %vm163_vm0, %v1405_v0 }
  0x45   : > { %190 = vst.msk [vmem:[#allocation2 + $0xd0] sm:$0xff] %vm163_vm0, %v1405_v0 }
  0x46   : > { %191 = vst.msk [vmem:[#allocation2 + $0xd8] sm:$0xff] %vm163_vm0, %v1405_v0 }
  0x47   : > { %192 = vst.msk [vmem:[#allocation2 + $0xe0] sm:$0xff] %vm163_vm0, %v1405_v0 }
  0x48   : > { %193 = vst.msk [vmem:[#allocation2 + $0xe8] sm:$0xff] %vm163_vm0, %v1405_v0 }
  0x49   : > { %194 = vst.msk [vmem:[#allocation2 + $0xf0] sm:$0xff] %vm163_vm0, %v1405_v0 }
  0x4a   : > { %195 = vst.msk [vmem:[#allocation2 + $0xf8] sm:$0xff] %vm163_vm0, %v1405_v0 }
  0x4b PF: > { %v232_v1 = vld [vmem:[%s1496_s27 + $0x20] sm:$0xff]  ;;  %v233_v2 = vld [vmem:[%s1496_s27 + $0x28] sm:$0xff]  ;;  %v234_v14 = vld [vmem:[%s1496_s27 + $0x30] sm:$0xff]  ;;  %vm612_vm1 = vcmask 7168   ;;  %p1161_p2 = scmp.ne.s32.totalorder %s1384_s9, 1 }
  0x4c   : > { %v228_v3 = vld [vmem:[%s1496_s27] sm:$0xff]  ;;  %v300_v4 = vunpack.c.l.bf16 %v232_v1  ;;  %v301_v5 = vunpack.c.h.bf16 %v232_v1  ;;  %v302_v6 = vunpack.c.l.bf16 %v233_v2  ;;  %v229_v7 = vld [vmem:[%s1496_s27 + $0x8] sm:$0xff]  ;;  %v303_v10 = vunpack.c.h.bf16 %v233_v2  ;;  %v235_v15 = vld [vmem:[%s1496_s27 + $0x38] sm:$0xff] }
  0x4d   : > { %v236_v8 = vld [vmem:[%s1496_s27 + $0x40] sm:$0xff]  ;;  %v237_v9 = vld [vmem:[%s1496_s27 + $0x48] sm:$0xff]  ;;  %v292_v11 = vunpack.c.l.bf16 %v228_v3  ;;  %v293_v12 = vunpack.c.h.bf16 %v228_v3  ;;  %v294_v13 = vunpack.c.l.bf16 %v229_v7  ;;  %v230_v20 = vld [vmem:[%s1496_s27 + $0x10] sm:$0xff]  ;;  %v295_v21 = vunpack.c.h.bf16 %v229_v7 }
  0x4e   : > { %v430_v16 = vadd.f32 %v301_v5, %v300_v4  ;;  %v308_v17 = vunpack.c.l.bf16 %v236_v8  ;;  %v309_v18 = vunpack.c.h.bf16 %v236_v8  ;;  %v310_v19 = vunpack.c.l.bf16 %v237_v9  ;;  %v231_v25 = vld [vmem:[%s1496_s27 + $0x18] sm:$0xff]  ;;  %v238_v30 = vld [vmem:[%s1496_s27 + $0x50] sm:$0xff]  ;;  %v240_v45 = vld [vmem:[%s1496_s27 + $0x60] sm:$0xff] }
  0x4f   : > { %v420_v22 = vadd.f32 %v293_v12, %v292_v11  ;;  %v304_v23 = vunpack.c.l.bf16 %v234_v14  ;;  %v305_v24 = vunpack.c.h.bf16 %v234_v14  ;;  %v311_v27 = vunpack.c.h.bf16 %v237_v9  ;;  %v239_v35 = vld [vmem:[%s1496_s27 + $0x58] sm:$0xff]  ;;  %v242_v40 = vld [vmem:[%s1496_s27 + $0x70] sm:$0xff]  ;;  %v244_v54 = vld [vmem:[%s1496_s27 + $0x80] sm:$0xff] }
  0x50   : > { %v431_v26 = vadd.f32 %v430_v16, %v302_v6  ;;  %v440_v28 = vadd.f32 %v309_v18, %v308_v17  ;;  %v306_v29 = vunpack.c.l.bf16 %v235_v15  ;;  %v296_v33 = vunpack.c.l.bf16 %v230_v20  ;;  %v243_v49 = vld [vmem:[%s1496_s27 + $0x78] sm:$0xff]  ;;  %v241_v57 = vld [vmem:[%s1496_s27 + $0x68] sm:$0xff]  ;;  %v248_v6 = vld [vmem:[%s1496_s27 + $0xa0] sm:$0xff] }
  0x51   : > { %v421_v31 = vadd.f32 %v420_v22, %v294_v13  ;;  %v435_v32 = vadd.f32 %v305_v24, %v304_v23  ;;  %v297_v34 = vunpack.c.h.bf16 %v230_v20  ;;  %v307_v38 = vunpack.c.h.bf16 %v235_v15  ;;  %v245_v62 = vld [vmem:[%s1496_s27 + $0x88] sm:$0xff]  ;;  %v250_v11 = vld [vmem:[%s1496_s27 + $0xb0] sm:$0xff]  ;;  %v247_v23 = vld [vmem:[%s1496_s27 + $0x98] sm:$0xff] }
  0x52   : > { %v432_v36 = vadd.f32 %v431_v26, %v303_v10  ;;  %v441_v37 = vadd.f32 %v440_v28, %v310_v19  ;;  %v298_v39 = vunpack.c.l.bf16 %v231_v25  ;;  %v312_v44 = vunpack.c.l.bf16 %v238_v30  ;;  %v246_v10 = vld [vmem:[%s1496_s27 + $0x90] sm:$0xff]  ;;  %v249_v18 = vld [vmem:[%s1496_s27 + $0xa8] sm:$0xff]  ;;  %v251_v26 = vld [vmem:[%s1496_s27 + $0xb8] sm:$0xff] }
  0x53   : > { %v422_v41 = vadd.f32 %v421_v31, %v295_v21  ;;  %v436_v42 = vadd.f32 %v435_v32, %v306_v29  ;;  %v425_v43 = vadd.f32 %v297_v34, %v296_v33  ;;  %v313_v47 = vunpack.c.h.bf16 %v238_v30  ;;  %v254_v33 = vld [vmem:[%s1496_s27 + $0xd0] sm:$0xff] }
  0x54   : > { %433 = vadd.xlane.f32.xlu1 %v432_v36  ;;  %v442_v46 = vadd.f32 %v441_v37, %v311_v27  ;;  %v314_v48 = vunpack.c.l.bf16 %v239_v35  ;;  %v299_v50 = vunpack.c.h.bf16 %v231_v25  ;;  %v320_v52 = vunpack.c.l.bf16 %v242_v40  ;;  %v252_v37 = vld [vmem:[%s1496_s27 + $0xc0] sm:$0xff] }
  0x55   : > { %423 = vadd.xlane.f32.xlu0 %v422_v41  ;;  %v426_v51 = vadd.f32 %v425_v43, %v298_v39  ;;  %v321_v53 = vunpack.c.h.bf16 %v242_v40  ;;  %v315_v55 = vunpack.c.h.bf16 %v239_v35  ;;  %v445_v56 = vadd.f32 %v313_v47, %v312_v44 }
  0x56   : > { %443 = vadd.xlane.f32.xlu2 %v442_v46  ;;  %v316_v58 = vunpack.c.l.bf16 %v240_v45  ;;  %v437_v59 = vadd.f32 %v436_v42, %v307_v38  ;;  %v322_v60 = vunpack.c.l.bf16 %v243_v49  ;;  %v317_v61 = vunpack.c.h.bf16 %v240_v45  ;;  %v256_v38 = vld [vmem:[%s1496_s27 + $0xe0] sm:$0xff]  ;;  %v255_v45 = vld [vmem:[%s1496_s27 + $0xd8] sm:$0xff] }
  0x57   : > { %v446_v63 = vadd.f32 %v445_v56, %v314_v48  ;;  %v455_v0 = vadd.f32 %v321_v53, %v320_v52  ;;  %v324_v1 = vunpack.c.l.bf16 %v244_v54  ;;  %v325_v2 = vunpack.c.h.bf16 %v244_v54  ;;  %v257_v53 = vld [vmem:[%s1496_s27 + $0xe8] sm:$0xff] }
  0x58   : > { %v427_v3 = vadd.f32 %v426_v51, %v299_v50  ;;  %v318_v4 = vunpack.c.l.bf16 %v241_v57  ;;  %v450_v5 = vadd.f32 %v317_v61, %v316_v58  ;;  %v326_v8 = vunpack.c.l.bf16 %v245_v62  ;;  %v253_v50 = vld [vmem:[%s1496_s27 + $0xc8] sm:$0xff] }
  0x59   : > { %v447_v7 = vadd.f32 %v446_v63, %v315_v55  ;;  %v460_v9 = vadd.f32 %v325_v2, %v324_v1  ;;  %v323_v12 = vunpack.c.h.bf16 %v243_v49  ;;  %v456_v13 = vadd.f32 %v455_v0, %v322_v60  ;;  %v260_v60 = vld [vmem:[%s1496_s27 + $0x100] sm:$0xff]  ;;  %v258_v0 = vld [vmem:[%s1496_s27 + $0xf0] sm:$0xff] }
  0x5a   : > { %v332_v14 = vunpack.c.l.bf16 %v248_v6  ;;  %v333_v15 = vunpack.c.h.bf16 %v248_v6  ;;  %v319_v16 = vunpack.c.h.bf16 %v241_v57  ;;  %v451_v17 = vadd.f32 %v450_v5, %v318_v4  ;;  %v262_v1 = vld [vmem:[%s1496_s27 + $0x110] sm:$0xff] }
  0x5b   : > { %v328_v19 = vunpack.c.l.bf16 %v246_v10  ;;  %v329_v20 = vunpack.c.h.bf16 %v246_v10  ;;  %v327_v21 = vunpack.c.h.bf16 %v245_v62  ;;  %v461_v22 = vadd.f32 %v460_v9, %v326_v8  ;;  %v261_v8 = vld [vmem:[%s1496_s27 + $0x108] sm:$0xff] }
  0x5c   : > { %438 = vadd.xlane.f32.xlu1 %v437_v59  ;;  %v336_v24 = vunpack.c.l.bf16 %v250_v11  ;;  %v337_v25 = vunpack.c.h.bf16 %v250_v11  ;;  %v457_v27 = vadd.f32 %v456_v13, %v323_v12  ;;  %v334_v28 = vunpack.c.l.bf16 %v249_v18  ;;  %v259_v13 = vld [vmem:[%s1496_s27 + $0xf8] sm:$0xff] }
  0x5d   : > { %428 = vadd.xlane.f32.xlu0 %v427_v3  ;;  %v470_v29 = vadd.f32 %v333_v15, %v332_v14  ;;  %v452_v30 = vadd.f32 %v451_v17, %v319_v16  ;;  %v330_v31 = vunpack.c.l.bf16 %v247_v23  ;;  %v465_v32 = vadd.f32 %v329_v20, %v328_v19  ;;  %v263_v16 = vld [vmem:[%s1496_s27 + $0x118] sm:$0xff] }
  0x5e   : > { %448 = vadd.xlane.f32.xlu2 %v447_v7  ;;  %v462_v34 = vadd.f32 %v461_v22, %v327_v21  ;;  %v338_v35 = vunpack.c.l.bf16 %v251_v26  ;;  %v475_v36 = vadd.f32 %v337_v25, %v336_v24  ;;  %v335_v39 = vunpack.c.h.bf16 %v249_v18 }
  0x5f   : > { %v471_v40 = vadd.f32 %v470_v29, %v334_v28  ;;  %v344_v41 = vunpack.c.l.bf16 %v254_v33  ;;  %v345_v42 = vunpack.c.h.bf16 %v254_v33  ;;  %v331_v43 = vunpack.c.h.bf16 %v247_v23  ;;  %v266_v23 = vld [vmem:[%s1496_s27 + $0x130] sm:$0xff]  ;;  %v268_v28 = vld [vmem:[%s1496_s27 + $0x140] sm:$0xff] }
  0x60   : > { %v466_v44 = vadd.f32 %v465_v32, %v330_v31  ;;  %v340_v46 = vunpack.c.l.bf16 %v252_v37  ;;  %v341_v47 = vunpack.c.h.bf16 %v252_v37  ;;  %v339_v48 = vunpack.c.h.bf16 %v251_v26 }
  0x61   : > { %v476_v49 = vadd.f32 %v475_v36, %v338_v35  ;;  %v348_v51 = vunpack.c.l.bf16 %v256_v38  ;;  %v349_v52 = vunpack.c.h.bf16 %v256_v38  ;;  %v472_v54 = vadd.f32 %v471_v40, %v335_v39  ;;  %v267_v35 = vld [vmem:[%s1496_s27 + $0x138] sm:$0xff]  ;;  %v265_v40 = vld [vmem:[%s1496_s27 + $0x128] sm:$0xff] }
  0x62   : > { %v346_v55 = vunpack.c.l.bf16 %v255_v45  ;;  %v485_v56 = vadd.f32 %v345_v42, %v344_v41  ;;  %v467_v57 = vadd.f32 %v466_v44, %v331_v43  ;;  %v342_v58 = vunpack.c.l.bf16 %v253_v50  ;;  %v269_v43 = vld [vmem:[%s1496_s27 + $0x148] sm:$0xff] }
  0x63   : > { %v480_v59 = vadd.f32 %v341_v47, %v340_v46  ;;  %v477_v61 = vadd.f32 %v476_v49, %v339_v48  ;;  %v350_v62 = vunpack.c.l.bf16 %v257_v53  ;;  %v490_v63 = vadd.f32 %v349_v52, %v348_v51 }
  0x64   : > { %458 = vadd.xlane.f32.xlu1 %v457_v27  ;;  %v347_v2 = vunpack.c.h.bf16 %v255_v45  ;;  %v486_v3 = vadd.f32 %v485_v56, %v346_v55  ;;  %v356_v4 = vunpack.c.l.bf16 %v260_v60  ;;  %v357_v5 = vunpack.c.h.bf16 %v260_v60  ;;  %v264_v27 = vld [vmem:[%s1496_s27 + $0x120] sm:$0xff]  ;;  %v274_v55 = vld [vmem:[%s1496_s27 + $0x170] sm:$0xff] }
  0x65   : > { %453 = vadd.xlane.f32.xlu0 %v452_v30  ;;  %v343_v6 = vunpack.c.h.bf16 %v253_v50  ;;  %v481_v7 = vadd.f32 %v480_v59, %v342_v58  ;;  %v352_v9 = vunpack.c.l.bf16 %v258_v0  ;;  %v353_v10 = vunpack.c.h.bf16 %v258_v0  ;;  %v272_v50 = vld [vmem:[%s1496_s27 + $0x160] sm:$0xff] }
  0x66   : > { %463 = vadd.xlane.f32.xlu2 %v462_v34  ;;  %v351_v11 = vunpack.c.h.bf16 %v257_v53  ;;  %v491_v12 = vadd.f32 %v490_v63, %v350_v62  ;;  %v360_v14 = vunpack.c.l.bf16 %v262_v1  ;;  %v361_v15 = vunpack.c.h.bf16 %v262_v1  ;;  %v273_v62 = vld [vmem:[%s1496_s27 + $0x168] sm:$0xff] }
  0x67   : > { %v487_v17 = vadd.f32 %v486_v3, %v347_v2  ;;  %v358_v18 = vunpack.c.l.bf16 %v261_v8  ;;  %v500_v19 = vadd.f32 %v357_v5, %v356_v4  ;;  %v482_v20 = vadd.f32 %v481_v7, %v343_v6  ;;  %v271_v3 = vld [vmem:[%s1496_s27 + $0x158] sm:$0xff] }
  0x68   : > { %v354_v21 = vunpack.c.l.bf16 %v259_v13  ;;  %v495_v22 = vadd.f32 %v353_v10, %v352_v9  ;;  %v492_v24 = vadd.f32 %v491_v12, %v351_v11  ;;  %v362_v25 = vunpack.c.l.bf16 %v263_v16  ;;  %v275_v6 = vld [vmem:[%s1496_s27 + $0x178] sm:$0xff] }
  0x69   : > { %v505_v26 = vadd.f32 %v361_v15, %v360_v14  ;;  %v359_v29 = vunpack.c.h.bf16 %v261_v8  ;;  %v501_v30 = vadd.f32 %v500_v19, %v358_v18  ;;  %v368_v31 = vunpack.c.l.bf16 %v266_v23  ;;  %v280_v18 = vld [vmem:[%s1496_s27 + $0x1a0] sm:$0xff] }
  0x6a   : > { %v369_v32 = vunpack.c.h.bf16 %v266_v23  ;;  %v355_v33 = vunpack.c.h.bf16 %v259_v13  ;;  %v496_v34 = vadd.f32 %v495_v22, %v354_v21  ;;  %v364_v36 = vunpack.c.l.bf16 %v264_v27  ;;  %v278_v13 = vld [vmem:[%s1496_s27 + $0x190] sm:$0xff] }
  0x6b   : > { %v365_v37 = vunpack.c.h.bf16 %v264_v27  ;;  %v363_v38 = vunpack.c.h.bf16 %v263_v16  ;;  %v506_v39 = vadd.f32 %v505_v26, %v362_v25  ;;  %v372_v41 = vunpack.c.l.bf16 %v268_v28  ;;  %v279_v25 = vld [vmem:[%s1496_s27 + $0x198] sm:$0xff] }
  0x6c   : > { %473 = vadd.xlane.f32.xlu1 %v472_v54  ;;  %v373_v42 = vunpack.c.h.bf16 %v268_v28  ;;  %v502_v44 = vadd.f32 %v501_v30, %v359_v29  ;;  %v370_v45 = vunpack.c.l.bf16 %v267_v35  ;;  %v515_v46 = vadd.f32 %v369_v32, %v368_v31  ;;  %v270_v54 = vld [vmem:[%s1496_s27 + $0x150] sm:$0xff]  ;;  %v277_v30 = vld [vmem:[%s1496_s27 + $0x188] sm:$0xff] }
  0x6d   : > { %468 = vadd.xlane.f32.xlu0 %v467_v57  ;;  %v497_v47 = vadd.f32 %v496_v34, %v355_v33  ;;  %v366_v48 = vunpack.c.l.bf16 %v265_v40  ;;  %v510_v49 = vadd.f32 %v365_v37, %v364_v36  ;;  %v507_v51 = vadd.f32 %v506_v39, %v363_v38  ;;  %v281_v33 = vld [vmem:[%s1496_s27 + $0x1a8] sm:$0xff] }
  0x6e   : > { %478 = vadd.xlane.f32.xlu2 %v477_v61  ;;  %v374_v52 = vunpack.c.l.bf16 %v269_v43  ;;  %v520_v53 = vadd.f32 %v373_v42, %v372_v41  ;;  %v371_v56 = vunpack.c.h.bf16 %v267_v35  ;;  %v516_v57 = vadd.f32 %v515_v46, %v370_v45  ;;  %v286_v45 = vld [vmem:[%s1496_s27 + $0x1d0] sm:$0xff] }
  0x6f   : > { %v380_v58 = vunpack.c.l.bf16 %v272_v50  ;;  %v381_v59 = vunpack.c.h.bf16 %v272_v50  ;;  %v367_v60 = vunpack.c.h.bf16 %v265_v40  ;;  %v511_v61 = vadd.f32 %v510_v49, %v366_v48  ;;  %v284_v40 = vld [vmem:[%s1496_s27 + $0x1c0] sm:$0xff] }
  0x70   : > { %v376_v63 = vunpack.c.l.bf16 %v270_v54  ;;  %v377_v0 = vunpack.c.h.bf16 %v270_v54  ;;  %v375_v1 = vunpack.c.h.bf16 %v269_v43  ;;  %v521_v2 = vadd.f32 %v520_v53, %v374_v52  ;;  %v285_v52 = vld [vmem:[%s1496_s27 + $0x1c8] sm:$0xff] }
  0x71   : > { %v384_v4 = vunpack.c.l.bf16 %v274_v55  ;;  %v385_v5 = vunpack.c.h.bf16 %v274_v55  ;;  %v517_v7 = vadd.f32 %v516_v57, %v371_v56  ;;  %v382_v8 = vunpack.c.l.bf16 %v273_v62  ;;  %v283_v57 = vld [vmem:[%s1496_s27 + $0x1b8] sm:$0xff] }
  0x72   : > { %v530_v9 = vadd.f32 %v381_v59, %v380_v58  ;;  %v512_v10 = vadd.f32 %v511_v61, %v367_v60  ;;  %v378_v11 = vunpack.c.l.bf16 %v271_v3  ;;  %v525_v12 = vadd.f32 %v377_v0, %v376_v63  ;;  %v287_v60 = vld [vmem:[%s1496_s27 + $0x1d8] sm:$0xff] }
  0x73   : > { %v522_v14 = vadd.f32 %v521_v2, %v375_v1  ;;  %v386_v15 = vunpack.c.l.bf16 %v275_v6  ;;  %v535_v16 = vadd.f32 %v385_v5, %v384_v4  ;;  %v383_v19 = vunpack.c.h.bf16 %v273_v62 }
  0x74   : > { %488 = vadd.xlane.f32.xlu1 %v487_v17  ;;  %v276_v17 = vld [vmem:[%s1496_s27 + $0x180] sm:$0xff]  ;;  %v392_v21 = vunpack.c.l.bf16 %v278_v13  ;;  %v393_v22 = vunpack.c.h.bf16 %v278_v13  ;;  %v379_v23 = vunpack.c.h.bf16 %v271_v3  ;;  %v387_v28 = vunpack.c.h.bf16 %v275_v6  ;;  %v290_v3 = vld [vmem:[%s1496_s27 + $0x1f0] sm:$0xff] }
  0x75   : > { %483 = vadd.xlane.f32.xlu0 %v482_v20  ;;  %v531_v20 = vadd.f32 %v530_v9, %v382_v8  ;;  %v388_v26 = vunpack.c.l.bf16 %v276_v17  ;;  %v389_v27 = vunpack.c.h.bf16 %v276_v17  ;;  %v536_v29 = vadd.f32 %v535_v16, %v386_v15 }
  0x76   : > { %493 = vadd.xlane.f32.xlu2 %v492_v24  ;;  %v526_v24 = vadd.f32 %v525_v12, %v378_v11  ;;  %v396_v31 = vunpack.c.l.bf16 %v280_v18  ;;  %v397_v32 = vunpack.c.h.bf16 %v280_v18  ;;  %v394_v35 = vunpack.c.l.bf16 %v279_v25 }
  0x77   : > { %v532_v34 = vadd.f32 %v531_v20, %v383_v19  ;;  %v545_v36 = vadd.f32 %v393_v22, %v392_v21  ;;  %v390_v38 = vunpack.c.l.bf16 %v277_v30  ;;  %v540_v39 = vadd.f32 %v389_v27, %v388_v26  ;;  %v289_v19 = vld [vmem:[%s1496_s27 + $0x1e8] sm:$0xff] }
  0x78   : > { %v527_v37 = vadd.f32 %v526_v24, %v379_v23  ;;  %v537_v41 = vadd.f32 %v536_v29, %v387_v28  ;;  %v398_v42 = vunpack.c.l.bf16 %v281_v33  ;;  %v550_v43 = vadd.f32 %v397_v32, %v396_v31 }
  0x79   : > { %v395_v46 = vunpack.c.h.bf16 %v279_v25  ;;  %v404_v48 = vunpack.c.l.bf16 %v284_v40  ;;  %v405_v49 = vunpack.c.h.bf16 %v284_v40  ;;  %v391_v50 = vunpack.c.h.bf16 %v277_v30 }
  0x7a   : > { %v399_v55 = vunpack.c.h.bf16 %v281_v33  ;;  %v551_v56 = vadd.f32 %v550_v43, %v398_v42  ;;  %v408_v58 = vunpack.c.l.bf16 %v286_v45  ;;  %v409_v59 = vunpack.c.h.bf16 %v286_v45  ;;  %v198_v33 = vld [vmem:[#allocation2 + $0x10] sm:$0xff]  ;;  %v199_v42 = vld [vmem:[#allocation2 + $0x18] sm:$0xff]  ;;  %v197_v43 = vld [vmem:[#allocation2 + $0x8] sm:$0xff] }
  0x7b   : > { %v406_v62 = vunpack.c.l.bf16 %v285_v52  ;;  %v560_v63 = vadd.f32 %v405_v49, %v404_v48  ;;  %v402_v1 = vunpack.c.l.bf16 %v283_v57  ;;  %v410_v5 = vunpack.c.l.bf16 %v287_v60  ;;  %v201_v45 = vld [vmem:[#allocation2 + $0x28] sm:$0xff] }
  0x7c   : > { %503 = vadd.xlane.f32.xlu1 %v502_v44  ;;  %v282_v44 = vld [vmem:[%s1496_s27 + $0x1b0] sm:$0xff]  ;;  %v552_v4 = vadd.f32 %v551_v56, %v399_v55  ;;  %v565_v6 = vadd.f32 %v409_v59, %v408_v58  ;;  %v407_v8 = vunpack.c.h.bf16 %v285_v52  ;;  %v417_v11 = vunpack.c.h.bf16 %v290_v3 }
  0x7d   : > { %498 = vadd.xlane.f32.xlu0 %v497_v47  ;;  %v546_v47 = vadd.f32 %v545_v36, %v394_v35  ;;  %v400_v53 = vunpack.c.l.bf16 %v282_v44  ;;  %v401_v54 = vunpack.c.h.bf16 %v282_v44  ;;  %v561_v9 = vadd.f32 %v560_v63, %v406_v62  ;;  %v200_v36 = vld [vmem:[#allocation2 + $0x20] sm:$0xff]  ;;  %v202_v52 = vld [vmem:[#allocation2 + $0x30] sm:$0xff]  ;;  %v207_v63 = vld [vmem:[#allocation2 + $0x58] sm:$0xff] }
  0x7e   : > { %508 = vadd.xlane.f32.xlu2 %v507_v51  ;;  %v541_v51 = vadd.f32 %v540_v39, %v390_v38  ;;  %v403_v12 = vunpack.c.h.bf16 %v283_v57  ;;  %v411_v17 = vunpack.c.h.bf16 %v287_v60  ;;  %v566_v18 = vadd.f32 %v565_v6, %v410_v5  ;;  %v206_v60 = vld [vmem:[#allocation2 + $0x50] sm:$0xff]  ;;  %v209_v5 = vld [vmem:[#allocation2 + $0x68] sm:$0xff]  ;;  %v208_v6 = vld [vmem:[#allocation2 + $0x60] sm:$0xff] }
  0x7f   : > { %v547_v61 = vadd.f32 %v546_v47, %v395_v46  ;;  %v555_v2 = vadd.f32 %v401_v54, %v400_v53  ;;  %v562_v20 = vadd.f32 %v561_v9, %v407_v8  ;;  %v414_v24 = vunpack.c.l.bf16 %v289_v19  ;;  %v204_v54 = vld [vmem:[#allocation2 + $0x40] sm:$0xff]  ;;  %v210_v8 = vld [vmem:[#allocation2 + $0x70] sm:$0xff] }
  0x80   : > { %v542_v0 = vadd.f32 %v541_v51, %v391_v50  ;;  %v567_v26 = vadd.f32 %v566_v18, %v411_v17  ;;  %v415_v29 = vunpack.c.h.bf16 %v289_v19  ;;  %v203_v51 = vld [vmem:[#allocation2 + $0x38] sm:$0xff]  ;;  %v213_v17 = vld [vmem:[#allocation2 + $0x88] sm:$0xff] }
  0x81   : > { %v556_v13 = vadd.f32 %v555_v2, %v402_v1 }
  0x83   : > { %v557_v23 = vadd.f32 %v556_v13, %v403_v12 }
  0x84   : > { %518 = vadd.xlane.f32.xlu1 %v517_v7  ;;  %v288_v7 = vld [vmem:[%s1496_s27 + $0x1e0] sm:$0xff] }
  0x85   : > { %513 = vadd.xlane.f32.xlu0 %v512_v10  ;;  %v416_v10 = vunpack.c.l.bf16 %v290_v3  ;;  %v412_v15 = vunpack.c.l.bf16 %v288_v7  ;;  %v413_v16 = vunpack.c.h.bf16 %v288_v7 }
  0x86   : > { %523 = vadd.xlane.f32.xlu2 %v522_v14  ;;  %v291_v14 = vld [vmem:[%s1496_s27 + $0x1f8] sm:$0xff] }
  0x87   : > { %v418_v21 = vunpack.c.l.bf16 %v291_v14  ;;  %v575_v22 = vadd.f32 %v417_v11, %v416_v10  ;;  %v570_v25 = vadd.f32 %v413_v16, %v412_v15  ;;  %v419_v27 = vunpack.c.h.bf16 %v291_v14  ;;  %v212_v14 = vld [vmem:[#allocation2 + $0x80] sm:$0xff]  ;;  %v211_v15 = vld [vmem:[#allocation2 + $0x78] sm:$0xff] }
  0x89   : > { %v576_v28 = vadd.f32 %v575_v22, %v418_v21  ;;  %v571_v30 = vadd.f32 %v570_v25, %v414_v24  ;;  %v214_v24 = vld [vmem:[#allocation2 + $0x90] sm:$0xff] }
  0x8b   : > { %v577_v31 = vadd.f32 %v576_v28, %v419_v27  ;;  %v572_v32 = vadd.f32 %v571_v30, %v415_v29 }
  0x8c   : > { %533 = vadd.xlane.f32.xlu1 %v532_v34  ;;  %v196_v34 = vld [vmem:[#allocation2] sm:$0xff] }
  0x8d   : > { %528 = vadd.xlane.f32.xlu0 %v527_v37 }
  0x8e   : > { %538 = vadd.xlane.f32.xlu2 %v537_v41 }
  0x94   : > { %548 = vadd.xlane.f32.xlu1 %v547_v61  ;;  %v205_v61 = vld [vmem:[#allocation2 + $0x48] sm:$0xff] }
  0x95   : > { %543 = vadd.xlane.f32.xlu0 %v542_v0 }
  0x96   : > { %553 = vadd.xlane.f32.xlu2 %v552_v4 }
  0x9c   : > { %563 = vadd.xlane.f32.xlu1 %v562_v20 }
  0x9d   : > { %558 = vadd.xlane.f32.xlu0 %v557_v23  ;;  %v215_v23 = vld [vmem:[#allocation2 + $0x98] sm:$0xff] }
  0x9e   : > { %568 = vadd.xlane.f32.xlu2 %v567_v26  ;;  %v216_v26 = vld [vmem:[#allocation2 + $0xa0] sm:$0xff] }
  0xa4   : > { %578 = vadd.xlane.f32.xlu1 %v577_v31 }
  0xa5   : > { %573 = vadd.xlane.f32.xlu0 %v572_v32  ;;  %v218_v32 = vld [vmem:[#allocation2 + $0xb0] sm:$0xff] }
  0xc7   : > { %v434_v35 = vpop.xlane.xlu1 %433 }
  0xc8   : > { %v582_v37 = vadd.f32 %v434_v35, %v198_v33  ;;  %v424_v38 = vpop.xlane.xlu0 %423  ;;  %v217_v33 = vld [vmem:[#allocation2 + $0xa8] sm:$0xff]  ;;  %v219_v35 = vld [vmem:[#allocation2 + $0xb8] sm:$0xff] }
  0xc9   : > { %v580_v39 = vadd.f32 %v424_v38, %v196_v34  ;;  %v444_v40 = vpop.xlane.xlu2 %443 }
  0xca   : > { %615 = vst.msk [vmem:[#allocation2 + $0x10] sm:$0xff] %vm612_vm1, %v582_v37  ;;  %v584_v41 = vadd.f32 %v444_v40, %v200_v36 }
  0xcb   : > { %613 = vst.msk [vmem:[#allocation2] sm:$0xff] %vm612_vm1, %v580_v39 }
  0xcc   : > { %617 = vst.msk [vmem:[#allocation2 + $0x20] sm:$0xff] %vm612_vm1, %v584_v41  ;;  %v221_v41 = vld [vmem:[#allocation2 + $0xc8] sm:$0xff] }
  0xcf   : > { %v439_v44 = vpop.xlane.xlu1 %438 }
  0xd0   : > { %v583_v46 = vadd.f32 %v439_v44, %v199_v42  ;;  %v429_v47 = vpop.xlane.xlu0 %428  ;;  %v220_v42 = vld [vmem:[#allocation2 + $0xc0] sm:$0xff]  ;;  %v222_v44 = vld [vmem:[#allocation2 + $0xd0] sm:$0xff] }
  0xd1   : > { %v581_v48 = vadd.f32 %v429_v47, %v197_v43  ;;  %v449_v49 = vpop.xlane.xlu2 %448 }
  0xd2   : > { %616 = vst.msk [vmem:[#allocation2 + $0x18] sm:$0xff] %vm612_vm1, %v583_v46  ;;  %v585_v50 = vadd.f32 %v449_v49, %v201_v45 }
  0xd3   : > { %614 = vst.msk [vmem:[#allocation2 + $0x8] sm:$0xff] %vm612_vm1, %v581_v48 }
  0xd4   : > { %618 = vst.msk [vmem:[#allocation2 + $0x28] sm:$0xff] %vm612_vm1, %v585_v50  ;;  %v224_v50 = vld [vmem:[#allocation2 + $0xe0] sm:$0xff] }
  0xd7   : > { %v459_v53 = vpop.xlane.xlu1 %458 }
  0xd8   : > { %v587_v55 = vadd.f32 %v459_v53, %v203_v51  ;;  %v454_v56 = vpop.xlane.xlu0 %453  ;;  %v223_v51 = vld [vmem:[#allocation2 + $0xd8] sm:$0xff]  ;;  %v225_v53 = vld [vmem:[#allocation2 + $0xe8] sm:$0xff] }
  0xd9   : > { %v586_v57 = vadd.f32 %v454_v56, %v202_v52  ;;  %v464_v58 = vpop.xlane.xlu2 %463 }
  0xda   : > { %620 = vst.msk [vmem:[#allocation2 + $0x38] sm:$0xff] %vm612_vm1, %v587_v55  ;;  %v588_v59 = vadd.f32 %v464_v58, %v204_v54 }
  0xdb   : > { %619 = vst.msk [vmem:[#allocation2 + $0x30] sm:$0xff] %vm612_vm1, %v586_v57 }
  0xdc   : > { %621 = vst.msk [vmem:[#allocation2 + $0x40] sm:$0xff] %vm612_vm1, %v588_v59  ;;  %v227_v59 = vld [vmem:[#allocation2 + $0xf8] sm:$0xff] }
  0xdf   : > { %v474_v62 = vpop.xlane.xlu1 %473 }
  0xe0   : > { %v590_v0 = vadd.f32 %v474_v62, %v206_v60  ;;  %v469_v1 = vpop.xlane.xlu0 %468  ;;  %v226_v60 = vld [vmem:[#allocation2 + $0xf0] sm:$0xff] }
  0xe1   : > { %v589_v2 = vadd.f32 %v469_v1, %v205_v61  ;;  %v479_v3 = vpop.xlane.xlu2 %478 }
  0xe2   : > { %623 = vst.msk [vmem:[#allocation2 + $0x50] sm:$0xff] %vm612_vm1, %v590_v0  ;;  %v591_v4 = vadd.f32 %v479_v3, %v207_v63 }
  0xe3   : > { %622 = vst.msk [vmem:[#allocation2 + $0x48] sm:$0xff] %vm612_vm1, %v589_v2 }
  0xe4   : > { %624 = vst.msk [vmem:[#allocation2 + $0x58] sm:$0xff] %vm612_vm1, %v591_v4 }
  0xe7   : > { %v489_v7 = vpop.xlane.xlu1 %488 }
  0xe8   : > { %v593_v9 = vadd.f32 %v489_v7, %v209_v5  ;;  %v484_v10 = vpop.xlane.xlu0 %483 }
  0xe9   : > { %v592_v11 = vadd.f32 %v484_v10, %v208_v6  ;;  %v494_v12 = vpop.xlane.xlu2 %493 }
  0xea   : > { %626 = vst.msk [vmem:[#allocation2 + $0x68] sm:$0xff] %vm612_vm1, %v593_v9  ;;  %v594_v13 = vadd.f32 %v494_v12, %v210_v8 }
  0xeb   : > { %625 = vst.msk [vmem:[#allocation2 + $0x60] sm:$0xff] %vm612_vm1, %v592_v11 }
  0xec   : > { %627 = vst.msk [vmem:[#allocation2 + $0x70] sm:$0xff] %vm612_vm1, %v594_v13 }
  0xef   : > { %v504_v16 = vpop.xlane.xlu1 %503 }
  0xf0   : > { %v596_v18 = vadd.f32 %v504_v16, %v212_v14  ;;  %v499_v19 = vpop.xlane.xlu0 %498 }
  0xf1   : > { %v595_v20 = vadd.f32 %v499_v19, %v211_v15  ;;  %v509_v21 = vpop.xlane.xlu2 %508 }
  0xf2   : > { %629 = vst.msk [vmem:[#allocation2 + $0x80] sm:$0xff] %vm612_vm1, %v596_v18  ;;  %v597_v22 = vadd.f32 %v509_v21, %v213_v17 }
  0xf3   : > { %628 = vst.msk [vmem:[#allocation2 + $0x78] sm:$0xff] %vm612_vm1, %v595_v20 }
  0xf4   : > { %630 = vst.msk [vmem:[#allocation2 + $0x88] sm:$0xff] %vm612_vm1, %v597_v22 }
  0xf7   : > { %v519_v25 = vpop.xlane.xlu1 %518 }
  0xf8   : > { %v599_v27 = vadd.f32 %v519_v25, %v215_v23  ;;  %v514_v28 = vpop.xlane.xlu0 %513 }
  0xf9   : > { %v598_v29 = vadd.f32 %v514_v28, %v214_v24  ;;  %v524_v30 = vpop.xlane.xlu2 %523 }
  0xfa   : > { %632 = vst.msk [vmem:[#allocation2 + $0x98] sm:$0xff] %vm612_vm1, %v599_v27  ;;  %v600_v31 = vadd.f32 %v524_v30, %v216_v26 }
  0xfb   : > { %631 = vst.msk [vmem:[#allocation2 + $0x90] sm:$0xff] %vm612_vm1, %v598_v29 }
  0xfc   : > { %633 = vst.msk [vmem:[#allocation2 + $0xa0] sm:$0xff] %vm612_vm1, %v600_v31 }
  0xff   : > { %v534_v34 = vpop.xlane.xlu1 %533 }
 0x100   : > { %v602_v36 = vadd.f32 %v534_v34, %v218_v32  ;;  %v529_v37 = vpop.xlane.xlu0 %528 }
 0x101   : > { %v601_v38 = vadd.f32 %v529_v37, %v217_v33  ;;  %v539_v39 = vpop.xlane.xlu2 %538 }
 0x102   : > { %635 = vst.msk [vmem:[#allocation2 + $0xb0] sm:$0xff] %vm612_vm1, %v602_v36  ;;  %v603_v40 = vadd.f32 %v539_v39, %v219_v35 }
 0x103   : > { %634 = vst.msk [vmem:[#allocation2 + $0xa8] sm:$0xff] %vm612_vm1, %v601_v38 }
 0x104   : > { %636 = vst.msk [vmem:[#allocation2 + $0xb8] sm:$0xff] %vm612_vm1, %v603_v40 }
 0x107   : > { %v549_v43 = vpop.xlane.xlu1 %548 }
 0x108   : > { %v605_v45 = vadd.f32 %v549_v43, %v221_v41  ;;  %v544_v46 = vpop.xlane.xlu0 %543 }
 0x109   : > { %v604_v47 = vadd.f32 %v544_v46, %v220_v42  ;;  %v554_v48 = vpop.xlane.xlu2 %553 }
 0x10a   : > { %638 = vst.msk [vmem:[#allocation2 + $0xc8] sm:$0xff] %vm612_vm1, %v605_v45  ;;  %v606_v49 = vadd.f32 %v554_v48, %v222_v44 }
 0x10b   : > { %637 = vst.msk [vmem:[#allocation2 + $0xc0] sm:$0xff] %vm612_vm1, %v604_v47 }
 0x10c   : > { %639 = vst.msk [vmem:[#allocation2 + $0xd0] sm:$0xff] %vm612_vm1, %v606_v49 }
 0x10f   : > { %v564_v52 = vpop.xlane.xlu1 %563 }
 0x110   : > { %v608_v54 = vadd.f32 %v564_v52, %v224_v50  ;;  %v559_v55 = vpop.xlane.xlu0 %558 }
 0x111   : > { %v607_v56 = vadd.f32 %v559_v55, %v223_v51  ;;  %v569_v57 = vpop.xlane.xlu2 %568 }
 0x112   : > { %641 = vst.msk [vmem:[#allocation2 + $0xe0] sm:$0xff] %vm612_vm1, %v608_v54  ;;  %v609_v58 = vadd.f32 %v569_v57, %v225_v53 }
 0x113   : > { %640 = vst.msk [vmem:[#allocation2 + $0xd8] sm:$0xff] %vm612_vm1, %v607_v56 }
 0x114   : > { %642 = vst.msk [vmem:[#allocation2 + $0xe8] sm:$0xff] %vm612_vm1, %v609_v58 }
 0x117   : > { %v579_v61 = vpop.xlane.xlu1 %578  ;;  %648 = sbr.rel (%p1161_p2) target bundleno = 382 (0x17e), region = 36 }
 0x118   : > { %v611_v62 = vadd.f32 %v579_v61, %v227_v59  ;;  %v574_v63 = vpop.xlane.xlu0 %573 }
 0x119   : > { %v610_v0 = vadd.f32 %v574_v63, %v226_v60 }
 0x11a   : > { %644 = vst.msk [vmem:[#allocation2 + $0xf8] sm:$0xff] %vm612_vm1, %v611_v62 }
 0x11b   : > { %643 = vst.msk [vmem:[#allocation2 + $0xf0] sm:$0xff] %vm612_vm1, %v610_v0 }
 0x11c   : > { %v649_v1 = vld [vmem:[#allocation2] sm:$0xff]  ;;  %v650_v2 = vld [vmem:[#allocation2 + $0x8] sm:$0xff]  ;;  %v651_v3 = vld [vmem:[#allocation2 + $0x10] sm:$0xff] }
 0x11d   : > { %v1638_v4 = vadd.f32 1.0, %v649_v1  ;;  %v1640_v5 = vadd.f32 1.0, %v650_v2  ;;  %v1642_v6 = vadd.f32 1.0, %v651_v3  ;;  %v652_v7 = vld [vmem:[#allocation2 + $0x18] sm:$0xff]  ;;  %v653_v8 = vld [vmem:[#allocation2 + $0x20] sm:$0xff]  ;;  %v654_v9 = vld [vmem:[#allocation2 + $0x28] sm:$0xff] }
 0x11e   : > { %v1644_v10 = vadd.f32 1.0, %v652_v7  ;;  %v655_v11 = vld [vmem:[#allocation2 + $0x30] sm:$0xff]  ;;  %v1647_v12 = vadd.f32 1.0, %v653_v8  ;;  %v656_v13 = vld [vmem:[#allocation2 + $0x38] sm:$0xff]  ;;  %v1650_v14 = vadd.f32 1.0, %v654_v9  ;;  %v657_v15 = vld [vmem:[#allocation2 + $0x40] sm:$0xff] }
 0x11f   : > { %1240 = vrsqrt.f32 %v1638_v4  ;;  %v1653_v16 = vadd.f32 1.0, %v655_v11  ;;  %v658_v17 = vld [vmem:[#allocation2 + $0x48] sm:$0xff]  ;;  %v1656_v18 = vadd.f32 1.0, %v656_v13  ;;  %v659_v19 = vld [vmem:[#allocation2 + $0x50] sm:$0xff]  ;;  %v1659_v20 = vadd.f32 1.0, %v657_v15  ;;  %v660_v21 = vld [vmem:[#allocation2 + $0x58] sm:$0xff] }
 0x120   : > { %1242 = vrsqrt.f32 %v1640_v5  ;;  %v661_v22 = vld [vmem:[#allocation2 + $0x60] sm:$0xff]  ;;  %vm719_vm2 = vweird.f32 %v1638_v4  ;;  %vm729_vm3 = vweird.f32 %v1640_v5  ;;  %v1664_v23 = vadd.f32 1.0, %v658_v17  ;;  %v662_v17 = vld [vmem:[#allocation2 + $0x68] sm:$0xff]  ;;  %v667_v52 = vld [vmem:[#allocation2 + $0x90] sm:$0xff] }
 0x121   : > { %1244 = vrsqrt.f32 %v1642_v6  ;;  %vm739_vm4 = vweird.f32 %v1642_v6  ;;  %vm749_vm5 = vweird.f32 %v1644_v10  ;;  %v1671_v25 = vadd.f32 1.0, %v659_v19 }
 0x122   : > { %1246 = vrsqrt.f32 %v1644_v10  ;;  %vm759_vm6 = vweird.f32 %v1647_v12  ;;  %v1679_v28 = vadd.f32 1.0, %v660_v21  ;;  %v1681_v29 = vadd.f32 1.0, %v661_v22 }
 0x123   : > { %1248 = vrsqrt.f32 %v1647_v12  ;;  %vm769_vm9 = vweird.f32 %v1650_v14 }
 0x124   : > { %1250 = vrsqrt.f32 %v1650_v14 }
 0x125   : > { %v1666_v24 = vpop.eup %1240  ;;  %1252 = vrsqrt.f32 %v1653_v16 }
 0x126   : > { %v1673_v26 = vpop.eup %1242  ;;  %v714_v27 = vmul.f32 %v1666_v24, %v1638_v4  ;;  %1254 = vrsqrt.f32 %v1656_v18  ;;  %vm720_vm7 = vweird.f32 %v1666_v24 }
 0x127   : > { %v1683_v30 = vpop.eup %1244  ;;  %v724_v31 = vmul.f32 %v1673_v26, %v1640_v5  ;;  %vm730_vm8 = vweird.f32 %v1673_v26  ;;  %1256 = vrsqrt.f32 %v1659_v20  ;;  %vm1730_vm0 = vmor %vm719_vm2, %vm720_vm7  ;;  %vm809_vm7 = vweird.f32 %v1664_v23 }
 0x128   : > { %v1691_v32 = vpop.eup %1246  ;;  %v715_v33 = vmul.f32 %v1666_v24, %v714_v27  ;;  %v734_v34 = vmul.f32 %v1683_v30, %v1642_v6  ;;  %vm740_vm10 = vweird.f32 %v1683_v30  ;;  %1258 = vrsqrt.f32 %v1664_v23  ;;  %vm1743_vm11 = vmor %vm729_vm3, %vm730_vm8 }
 0x129   : > { %v1699_v35 = vpop.eup %1248  ;;  %v725_v36 = vmul.f32 %v1673_v26, %v724_v31  ;;  %v744_v37 = vmul.f32 %v1691_v32, %v1644_v10  ;;  %vm750_vm12 = vweird.f32 %v1691_v32  ;;  %1260 = vrsqrt.f32 %v1671_v25  ;;  %vm1755_vm2 = vmor %vm739_vm4, %vm740_vm10 }
 0x12a   : > { %v1706_v38 = vpop.eup %1250  ;;  %v716_v39 = vmul.f32 0.5, %v715_v33  ;;  %v735_v40 = vmul.f32 %v1683_v30, %v734_v34  ;;  %v754_v41 = vmul.f32 %v1699_v35, %v1647_v12  ;;  %vm760_vm13 = vweird.f32 %v1699_v35  ;;  %vm1770_vm4 = vmor %vm749_vm5, %vm750_vm12  ;;  %v664_v33 = vld [vmem:[#allocation2 + $0x78] sm:$0xff] }
 0x12b   : > { %v1712_v42 = vpop.eup %1252  ;;  %v726_v43 = vmul.f32 0.5, %v725_v36  ;;  %v745_v44 = vmul.f32 %v1691_v32, %v744_v37  ;;  %v764_v45 = vmul.f32 %v1706_v38, %v1650_v14  ;;  %vm770_vm14 = vweird.f32 %v1706_v38  ;;  %vm1785_vm5 = vmor %vm759_vm6, %vm760_vm13 }
 0x12c   : > { %v1719_v46 = vpop.eup %1254  ;;  %v717_v47 = vsub.f32 1.5, %v716_v39  ;;  %v736_v48 = vmul.f32 0.5, %v735_v40  ;;  %v755_v49 = vmul.f32 %v1699_v35, %v754_v41  ;;  %v774_v50 = vmul.f32 %v1712_v42, %v1653_v16  ;;  %vm1800_vm6 = vmor %vm769_vm9, %vm770_vm14 }
 0x12d   : > { %v1724_v51 = vpop.eup %1256  ;;  %v727_v53 = vsub.f32 1.5, %v726_v43  ;;  %v746_v54 = vmul.f32 0.5, %v745_v44  ;;  %v765_v55 = vmul.f32 %v1706_v38, %v764_v45  ;;  %vm780_vm15 = vweird.f32 %v1712_v42 }
 0x12e   : > { %v1736_v56 = vpop.eup %1258  ;;  %v718_v57 = vmul.f32 %v1666_v24, %v717_v47  ;;  %v737_v59 = vsub.f32 1.5, %v736_v48  ;;  %v756_v60 = vmul.f32 0.5, %v755_v49  ;;  %v775_v61 = vmul.f32 %v1712_v42, %v774_v50  ;;  %v666_v50 = vld [vmem:[#allocation2 + $0x88] sm:$0xff] }
 0x12f   : > { %v1748_v62 = vpop.eup %1260  ;;  %v728_v63 = vmul.f32 %v1673_v26, %v727_v53  ;;  %v747_v1 = vsub.f32 1.5, %v746_v54  ;;  %v766_v2 = vmul.f32 0.5, %v765_v55  ;;  %v784_v3 = vmul.f32 %v1719_v46, %v1656_v18 }
 0x130   : > { %vm799_vm3 = vweird.f32 %v1659_v20  ;;  %v722_v4 = vsel %vm1730_vm0, %v1666_v24, %v718_v57  ;;  %v738_v5 = vmul.f32 %v1683_v30, %v737_v59  ;;  %v757_v7 = vsub.f32 1.5, %v756_v60  ;;  %v663_v24 = vld [vmem:[#allocation2 + $0x70] sm:$0xff] }
 0x131   : > { %v776_v8 = vmul.f32 0.5, %v775_v61  ;;  %1033 = vst.msk [vmem:[%s1506_s30] sm:$0xff] %vm612_vm1, %v722_v4  ;;  %v732_v9 = vsel %vm1743_vm11, %v1673_v26, %v728_v63  ;;  %v748_v11 = vmul.f32 %v1691_v32, %v747_v1  ;;  %v767_v13 = vsub.f32 1.5, %v766_v2 }
 0x132   : > { %v785_v15 = vmul.f32 %v1719_v46, %v784_v3  ;;  %1034 = vst.msk [vmem:[%s1506_s30 + $0x8] sm:$0xff] %vm612_vm1, %v732_v9  ;;  %v742_v19 = vsel %vm1755_vm2, %v1683_v30, %v738_v5  ;;  %v758_v21 = vmul.f32 %v1699_v35, %v757_v7  ;;  %vm790_vm8 = vweird.f32 %v1719_v46 }
 0x133   : > { %v777_v22 = vsub.f32 1.5, %v776_v8  ;;  %vm819_vm10 = vweird.f32 %v1671_v25  ;;  %1035 = vst.msk [vmem:[%s1506_s30 + $0x10] sm:$0xff] %vm612_vm1, %v742_v19  ;;  %v752_v26 = vsel %vm1770_vm4, %v1691_v32, %v748_v11  ;;  %v768_v14 = vmul.f32 %v1706_v38, %v767_v13 }
 0x134   : > { %vm2392_vm9 = vweird.f32 %v1653_v16  ;;  %v786_v30 = vmul.f32 0.5, %v785_v15  ;;  %v794_v31 = vmul.f32 %v1724_v51, %v1659_v20  ;;  %1036 = vst.msk [vmem:[%s1506_s30 + $0x18] sm:$0xff] %vm612_vm1, %v752_v26  ;;  %v762_v32 = vsel %vm1785_vm5, %v1699_v35, %v758_v21 }
 0x135   : > { %vm1816_vm11 = vmor %vm2392_vm9, %vm780_vm15  ;;  %v778_v34 = vmul.f32 %v1712_v42, %v777_v22  ;;  %v804_v16 = vmul.f32 %v1736_v56, %v1664_v23  ;;  %v1830_v36 = vadd.f32 1.0, %v662_v17  ;;  %1037 = vst.msk [vmem:[%s1506_s30 + $0x20] sm:$0xff] %vm612_vm1, %v762_v32  ;;  %v772_v37 = vsel %vm1800_vm6, %v1706_v38, %v768_v14  ;;  %v668_v23 = vld [vmem:[#allocation2 + $0x98] sm:$0xff] }
 0x136   : > { %v787_v39 = vsub.f32 1.5, %v786_v30  ;;  %v795_v40 = vmul.f32 %v1724_v51, %v794_v31  ;;  %v1838_v41 = vadd.f32 1.0, %v663_v24  ;;  %1038 = vst.msk [vmem:[%s1506_s30 + $0x28] sm:$0xff] %vm612_vm1, %v772_v37  ;;  %vm2395_vm12 = vweird.f32 %v1656_v18  ;;  %v665_v18 = vld [vmem:[#allocation2 + $0x80] sm:$0xff] }
 0x137   : > { %v782_v35 = vsel %vm1816_vm11, %v1712_v42, %v778_v34  ;;  %vm1849_vm13 = vmor %vm2395_vm12, %vm790_vm8  ;;  %v805_v38 = vmul.f32 %v1736_v56, %v804_v16  ;;  %v814_v44 = vmul.f32 %v1748_v62, %v1671_v25  ;;  %v1856_v45 = vadd.f32 1.0, %v664_v33  ;;  %v678_v34 = vld [vmem:[#allocation2 + $0xe8] sm:$0xff] }
 0x138   : > { %1039 = vst.msk [vmem:[%s1506_s30 + $0x30] sm:$0xff] %vm612_vm1, %v782_v35  ;;  %v788_v42 = vmul.f32 %v1719_v46, %v787_v39  ;;  %v796_v47 = vmul.f32 0.5, %v795_v40  ;;  %vm800_vm14 = vweird.f32 %v1724_v51  ;;  %1262 = vrsqrt.f32 %v1679_v28 }
 0x139   : > { %v806_v48 = vmul.f32 0.5, %v805_v38  ;;  %vm810_vm15 = vweird.f32 %v1736_v56  ;;  %v815_v49 = vmul.f32 %v1748_v62, %v814_v44  ;;  %1264 = vrsqrt.f32 %v1681_v29  ;;  %vm1875_vm2 = vmor %vm799_vm3, %vm800_vm14 }
 0x13a   : > { %v792_v53 = vsel %vm1849_vm13, %v1719_v46, %v788_v42  ;;  %v797_v54 = vsub.f32 1.5, %v796_v47  ;;  %vm820_vm0 = vweird.f32 %v1748_v62  ;;  %1266 = vrsqrt.f32 %v1830_v36  ;;  %vm1888_vm5 = vmor %vm809_vm7, %vm810_vm15 }
 0x13b   : > { %1040 = vst.msk [vmem:[%s1506_s30 + $0x38] sm:$0xff] %vm612_vm1, %v792_v53  ;;  %v807_v57 = vsub.f32 1.5, %v806_v48  ;;  %v816_v58 = vmul.f32 0.5, %v815_v49  ;;  %vm829_vm4 = vweird.f32 %v1679_v28  ;;  %1268 = vrsqrt.f32 %v1838_v41  ;;  %vm1909_vm7 = vmor %vm819_vm10, %vm820_vm0 }
 0x13c   : > { %v1881_v46 = vadd.f32 1.0, %v665_v18  ;;  %v798_v59 = vmul.f32 %v1724_v51, %v797_v54  ;;  %1270 = vrsqrt.f32 %v1856_v45  ;;  %v1893_v60 = vadd.f32 1.0, %v666_v50 }
 0x13d   : > { %v1895_v61 = vadd.f32 1.0, %v667_v52  ;;  %v808_v63 = vmul.f32 %v1736_v56, %v807_v57  ;;  %v817_v0 = vsub.f32 1.5, %v816_v58  ;;  %vm839_vm3 = vweird.f32 %v1681_v29 }
 0x13e   : > { %1272 = vrsqrt.f32 %v1881_v46  ;;  %v1900_v1 = vpop.eup %1262  ;;  %v802_v2 = vsel %vm1875_vm2, %v1724_v51, %v798_v59  ;;  %vm849_vm6 = vweird.f32 %v1830_v36  ;;  %vm859_vm8 = vweird.f32 %v1838_v41 }
 0x13f   : > { %1274 = vrsqrt.f32 %v1893_v60  ;;  %v1916_v4 = vpop.eup %1264  ;;  %1041 = vst.msk [vmem:[%s1506_s30 + $0x40] sm:$0xff] %vm612_vm1, %v802_v2  ;;  %v812_v51 = vsel %vm1888_vm5, %v1736_v56, %v808_v63  ;;  %v818_v25 = vmul.f32 %v1748_v62, %v817_v0  ;;  %v824_v5 = vmul.f32 %v1900_v1, %v1679_v28  ;;  %v669_v0 = vld [vmem:[#allocation2 + $0xa0] sm:$0xff] }
 0x140   : > { %vm830_vm10 = vweird.f32 %v1900_v1  ;;  %vm869_vm9 = vweird.f32 %v1856_v45  ;;  %v1928_v6 = vpop.eup %1266  ;;  %1042 = vst.msk [vmem:[%s1506_s30 + $0x48] sm:$0xff] %vm612_vm1, %v812_v51  ;;  %v834_v7 = vmul.f32 %v1916_v4, %v1681_v29  ;;  %vm840_vm11 = vweird.f32 %v1916_v4  ;;  %v671_v51 = vld [vmem:[#allocation2 + $0xb0] sm:$0xff] }
 0x141   : > { %vm879_vm12 = vweird.f32 %v1881_v46  ;;  %1276 = vrsqrt.f32 %v1895_v61  ;;  %v1937_v56 = vadd.f32 1.0, %v668_v23  ;;  %v1939_v8 = vpop.eup %1268  ;;  %v822_v9 = vsel %vm1909_vm7, %v1748_v62, %v818_v25  ;;  %vm1980_vm7 = vmor %vm829_vm4, %vm830_vm10  ;;  %v670_v23 = vld [vmem:[#allocation2 + $0xa8] sm:$0xff]  ;;  %v672_v25 = vld [vmem:[#allocation2 + $0xb8] sm:$0xff] }
 0x142   : > { %v825_v11 = vmul.f32 %v1900_v1, %v824_v5  ;;  %v844_v10 = vmul.f32 %v1928_v6, %v1830_v36  ;;  %vm850_vm13 = vweird.f32 %v1928_v6  ;;  %v1949_v13 = vpop.eup %1270  ;;  %1043 = vst.msk [vmem:[%s1506_s30 + $0x50] sm:$0xff] %vm612_vm1, %v822_v9  ;;  %v835_v15 = vmul.f32 %v1916_v4, %v834_v7  ;;  %vm1991_vm14 = vmor %vm839_vm3, %vm840_vm11 }
 0x143   : > { %v854_v17 = vmul.f32 %v1939_v8, %v1838_v41  ;;  %vm860_vm15 = vweird.f32 %v1939_v8  ;;  %1278 = vrsqrt.f32 %v1937_v56  ;;  %v864_v12 = vmul.f32 %v1949_v13, %v1856_v45  ;;  %vm2003_vm4 = vmor %vm849_vm6, %vm850_vm13 }
 0x144   : > { %v1958_v62 = vpop.eup %1272  ;;  %v826_v19 = vmul.f32 0.5, %v825_v11  ;;  %v845_v21 = vmul.f32 %v1928_v6, %v844_v10  ;;  %vm870_vm0 = vweird.f32 %v1949_v13  ;;  %v836_v24 = vmul.f32 0.5, %v835_v15  ;;  %vm2017_vm3 = vmor %vm859_vm8, %vm860_vm15 }
 0x145   : > { %v1964_v22 = vpop.eup %1274  ;;  %v855_v26 = vmul.f32 %v1939_v8, %v854_v17  ;;  %v874_v14 = vmul.f32 %v1958_v62, %v1881_v46  ;;  %vm880_vm2 = vweird.f32 %v1958_v62  ;;  %v865_v31 = vmul.f32 %v1949_v13, %v864_v12  ;;  %vm2031_vm6 = vmor %vm869_vm9, %vm870_vm0  ;;  %v675_v12 = vld [vmem:[#allocation2 + $0xd0] sm:$0xff] }
 0x146   : > { %v827_v27 = vsub.f32 1.5, %v826_v19  ;;  %v846_v30 = vmul.f32 0.5, %v845_v21  ;;  %v884_v33 = vmul.f32 %v1964_v22, %v1893_v60  ;;  %v837_v16 = vsub.f32 1.5, %v836_v24  ;;  %vm2046_vm8 = vmor %vm879_vm12, %vm880_vm2  ;;  %v677_v24 = vld [vmem:[#allocation2 + $0xe0] sm:$0xff] }
 0x147   : > { %v1974_v32 = vpop.eup %1276  ;;  %v856_v37 = vmul.f32 0.5, %v855_v26  ;;  %v875_v39 = vmul.f32 %v1958_v62, %v874_v14  ;;  %vm890_vm5 = vweird.f32 %v1964_v22  ;;  %v866_v43 = vmul.f32 0.5, %v865_v31 }
 0x148   : > { %v828_v40 = vmul.f32 %v1900_v1, %v827_v27  ;;  %v847_v28 = vsub.f32 1.5, %v846_v30  ;;  %v885_v38 = vmul.f32 %v1964_v22, %v884_v33  ;;  %v838_v42 = vmul.f32 %v1916_v4, %v837_v16 }
 0x149   : > { %v1996_v44 = vpop.eup %1278  ;;  %v857_v47 = vsub.f32 1.5, %v856_v37  ;;  %v876_v18 = vmul.f32 0.5, %v875_v39  ;;  %v894_v48 = vmul.f32 %v1974_v32, %v1895_v61  ;;  %v867_v52 = vsub.f32 1.5, %v866_v43 }
 0x14a   : > { %v832_v49 = vsel %vm1980_vm7, %v1900_v1, %v828_v40  ;;  %v848_v50 = vmul.f32 %v1928_v6, %v847_v28  ;;  %v886_v53 = vmul.f32 0.5, %v885_v38  ;;  %v842_v54 = vsel %vm1991_vm14, %v1916_v4, %v838_v42 }
 0x14b   : > { %1044 = vst.msk [vmem:[%s1506_s30 + $0x58] sm:$0xff] %vm612_vm1, %v832_v49  ;;  %v858_v55 = vmul.f32 %v1939_v8, %v857_v47  ;;  %v877_v57 = vsub.f32 1.5, %v876_v18  ;;  %v895_v58 = vmul.f32 %v1974_v32, %v894_v48  ;;  %v868_v20 = vmul.f32 %v1949_v13, %v867_v52 }
 0x14c   : > { %1045 = vst.msk [vmem:[%s1506_s30 + $0x60] sm:$0xff] %vm612_vm1, %v842_v54  ;;  %v852_v59 = vsel %vm2003_vm4, %v1928_v6, %v848_v50  ;;  %v887_v63 = vsub.f32 1.5, %v886_v53  ;;  %vm900_vm10 = vweird.f32 %v1974_v32  ;;  %vm2416_vm9 = vweird.f32 %v1893_v60 }
 0x14d   : > { %1046 = vst.msk [vmem:[%s1506_s30 + $0x68] sm:$0xff] %vm612_vm1, %v852_v59  ;;  %v862_v1 = vsel %vm2017_vm3, %v1939_v8, %v858_v55  ;;  %v878_v2 = vmul.f32 %v1958_v62, %v877_v57  ;;  %vm2061_vm11 = vmor %vm2416_vm9, %vm890_vm5  ;;  %v896_v3 = vmul.f32 0.5, %v895_v58  ;;  %v904_v4 = vmul.f32 %v1996_v44, %v1937_v56 }
 0x14e   : > { %1047 = vst.msk [vmem:[%s1506_s30 + $0x70] sm:$0xff] %vm612_vm1, %v862_v1  ;;  %v872_v5 = vsel %vm2031_vm6, %v1949_v13, %v868_v20  ;;  %v888_v6 = vmul.f32 %v1964_v22, %v887_v63  ;;  %vm909_vm12 = vweird.f32 %v1937_v56  ;;  %v2080_v9 = vadd.f32 1.0, %v669_v0  ;;  %v679_v56 = vld [vmem:[#allocation2 + $0xf0] sm:$0xff] }
 0x14f   : > { %1048 = vst.msk [vmem:[%s1506_s30 + $0x78] sm:$0xff] %vm612_vm1, %v872_v5  ;;  %v882_v60 = vsel %vm2046_vm8, %v1958_v62, %v878_v2  ;;  %v897_v7 = vsub.f32 1.5, %v896_v3  ;;  %v905_v8 = vmul.f32 %v1996_v44, %v904_v4  ;;  %vm2419_vm13 = vweird.f32 %v1895_v61  ;;  %v673_v62 = vld [vmem:[#allocation2 + $0xc0] sm:$0xff]  ;;  %v674_v61 = vld [vmem:[#allocation2 + $0xc8] sm:$0xff] }
 0x150   : > { %1049 = vst.msk [vmem:[%s1506_s30 + $0x80] sm:$0xff] %vm612_vm1, %v882_v60  ;;  %v892_v11 = vsel %vm2061_vm11, %v1964_v22, %v888_v6  ;;  %vm2091_vm14 = vmor %vm2419_vm13, %vm900_vm10  ;;  %v2095_v13 = vadd.f32 1.0, %v670_v23  ;;  %v2097_v15 = vadd.f32 1.0, %v671_v51  ;;  %v2099_v17 = vadd.f32 1.0, %v672_v25  ;;  %v676_v22 = vld [vmem:[#allocation2 + $0xd8] sm:$0xff] }
 0x151   : > { %1050 = vst.msk [vmem:[%s1506_s30 + $0x88] sm:$0xff] %vm612_vm1, %v892_v11  ;;  %v898_v19 = vmul.f32 %v1974_v32, %v897_v7  ;;  %v906_v21 = vmul.f32 0.5, %v905_v8  ;;  %vm910_vm15 = vweird.f32 %v1996_v44  ;;  %1280 = vrsqrt.f32 %v2080_v9 }
 0x152   : > { %1282 = vrsqrt.f32 %v2095_v13  ;;  %v2111_v27 = vadd.f32 1.0, %v673_v62  ;;  %vm2117_vm0 = vmor %vm909_vm12, %vm910_vm15  ;;  %v2122_v31 = vadd.f32 1.0, %v674_v61  ;;  %v2124_v33 = vadd.f32 1.0, %v675_v12 }
 0x153   : > { %v902_v26 = vsel %vm2091_vm14, %v1974_v32, %v898_v19  ;;  %v907_v14 = vsub.f32 1.5, %v906_v21  ;;  %1284 = vrsqrt.f32 %v2097_v15  ;;  %v2126_v32 = vadd.f32 1.0, %v676_v22 }
 0x154   : > { %1051 = vst.msk [vmem:[%s1506_s30 + $0x90] sm:$0xff] %vm612_vm1, %v902_v26  ;;  %1286 = vrsqrt.f32 %v2099_v17  ;;  %v2130_v37 = vadd.f32 1.0, %v677_v24  ;;  %vm919_vm2 = vweird.f32 %v2080_v9  ;;  %vm929_vm5 = vweird.f32 %v2095_v13 }
 0x155   : > { %v908_v16 = vmul.f32 %v1996_v44, %v907_v14  ;;  %1288 = vrsqrt.f32 %v2111_v27  ;;  %vm939_vm7 = vweird.f32 %v2097_v15  ;;  %vm949_vm4 = vweird.f32 %v2099_v17 }
 0x156   : > { %1290 = vrsqrt.f32 %v2122_v31  ;;  %v2143_v35 = vadd.f32 1.0, %v678_v34  ;;  %vm959_vm3 = vweird.f32 %v2111_v27  ;;  %v2153_v38 = vadd.f32 1.0, %v679_v56 }
 0x157   : > { %v2136_v39 = vpop.eup %1280  ;;  %v912_v40 = vsel %vm2117_vm0, %v1996_v44, %v908_v16  ;;  %1292 = vrsqrt.f32 %v2124_v33  ;;  %vm969_vm10 = vweird.f32 %v2122_v31 }
 0x158   : > { %v2145_v28 = vpop.eup %1282  ;;  %1052 = vst.msk [vmem:[%s1506_s30 + $0x98] sm:$0xff] %vm612_vm1, %v912_v40  ;;  %v914_v43 = vmul.f32 %v2136_v39, %v2080_v9  ;;  %1294 = vrsqrt.f32 %v2126_v32  ;;  %vm920_vm6 = vweird.f32 %v2136_v39 }
 0x159   : > { %v2155_v44 = vpop.eup %1284  ;;  %v924_v42 = vmul.f32 %v2145_v28, %v2095_v13  ;;  %vm930_vm8 = vweird.f32 %v2145_v28  ;;  %1296 = vrsqrt.f32 %v2130_v37  ;;  %vm2202_vm0 = vmor %vm919_vm2, %vm920_vm6  ;;  %vm2436_vm6 = vweird.f32 %v2124_v33 }
 0x15a   : > { %v2163_v29 = vpop.eup %1286  ;;  %v915_v47 = vmul.f32 %v2136_v39, %v914_v43  ;;  %v934_v18 = vmul.f32 %v2155_v44, %v2097_v15  ;;  %vm940_vm9 = vweird.f32 %v2155_v44  ;;  %1298 = vrsqrt.f32 %v2143_v35  ;;  %vm2215_vm11 = vmor %vm929_vm5, %vm930_vm8 }
 0x15b   : > { %v2171_v48 = vpop.eup %1288  ;;  %v925_v49 = vmul.f32 %v2145_v28, %v924_v42  ;;  %v944_v50 = vmul.f32 %v2163_v29, %v2099_v17  ;;  %vm950_vm12 = vweird.f32 %v2163_v29  ;;  %1300 = vrsqrt.f32 %v2153_v38  ;;  %vm2227_vm2 = vmor %vm939_vm7, %vm940_vm9 }
 0x15c   : > { %v2178_v36 = vpop.eup %1290  ;;  %v916_v52 = vmul.f32 0.5, %v915_v47  ;;  %v935_v53 = vmul.f32 %v2155_v44, %v934_v18  ;;  %v954_v54 = vmul.f32 %v2171_v48, %v2111_v27  ;;  %vm960_vm13 = vweird.f32 %v2171_v48  ;;  %vm2241_vm5 = vmor %vm949_vm4, %vm950_vm12 }
 0x15d   : > { %v2184_v55 = vpop.eup %1292  ;;  %v926_v41 = vmul.f32 0.5, %v925_v49  ;;  %v945_v57 = vmul.f32 %v2163_v29, %v944_v50  ;;  %v964_v58 = vmul.f32 %v2178_v36, %v2122_v31  ;;  %vm970_vm14 = vweird.f32 %v2178_v36  ;;  %vm2255_vm7 = vmor %vm959_vm3, %vm960_vm13 }
 0x15e   : > { %v2191_v59 = vpop.eup %1294  ;;  %v917_v20 = vsub.f32 1.5, %v916_v52  ;;  %v936_v45 = vmul.f32 0.5, %v935_v53  ;;  %v955_v63 = vmul.f32 %v2171_v48, %v954_v54  ;;  %v974_v0 = vmul.f32 %v2184_v55, %v2124_v33  ;;  %vm2270_vm4 = vmor %vm969_vm10, %vm970_vm14 }
 0x15f   : > { %v2196_v23 = vpop.eup %1296  ;;  %v927_v2 = vsub.f32 1.5, %v926_v41  ;;  %v946_v46 = vmul.f32 0.5, %v945_v57  ;;  %v965_v3 = vmul.f32 %v2178_v36, %v964_v58  ;;  %vm980_vm15 = vweird.f32 %v2184_v55 }
 0x160   : > { %v2208_v4 = vpop.eup %1298  ;;  %v918_v51 = vmul.f32 %v2136_v39, %v917_v20  ;;  %v937_v5 = vsub.f32 1.5, %v936_v45  ;;  %v956_v6 = vmul.f32 0.5, %v955_v63  ;;  %v975_v60 = vmul.f32 %v2184_v55, %v974_v0  ;;  %vm2285_vm8 = vmor %vm2436_vm6, %vm980_vm15 }
 0x161   : > { %v2220_v7 = vpop.eup %1300  ;;  %v928_v8 = vmul.f32 %v2145_v28, %v927_v2  ;;  %v947_v11 = vsub.f32 1.5, %v946_v46  ;;  %v966_v10 = vmul.f32 0.5, %v965_v3  ;;  %v984_v13 = vmul.f32 %v2191_v59, %v2126_v32 }
 0x162   : > { %v922_v62 = vsel %vm2202_vm0, %v2136_v39, %v918_v51  ;;  %v938_v19 = vmul.f32 %v2155_v44, %v937_v5  ;;  %v957_v21 = vsub.f32 1.5, %v956_v6  ;;  %v976_v61 = vmul.f32 0.5, %v975_v60 }
 0x163   : > { %1053 = vst.msk [vmem:[%s1506_s30 + $0xa0] sm:$0xff] %vm612_vm1, %v922_v62  ;;  %v932_v12 = vsel %vm2215_vm11, %v2145_v28, %v928_v8  ;;  %v948_v22 = vmul.f32 %v2163_v29, %v947_v11  ;;  %v967_v24 = vsub.f32 1.5, %v966_v10  ;;  %v985_v26 = vmul.f32 %v2191_v59, %v984_v13 }
 0x164   : > { %1054 = vst.msk [vmem:[%s1506_s30 + $0xa8] sm:$0xff] %vm612_vm1, %v932_v12  ;;  %v942_v14 = vsel %vm2227_vm2, %v2155_v44, %v938_v19  ;;  %v958_v30 = vmul.f32 %v2171_v48, %v957_v21  ;;  %v977_v34 = vsub.f32 1.5, %v976_v61  ;;  %vm990_vm3 = vweird.f32 %v2191_v59  ;;  %v680_v44 = vld [vmem:[#allocation2 + $0xf8] sm:$0xff] }
 0x165   : > { %1055 = vst.msk [vmem:[%s1506_s30 + $0xb0] sm:$0xff] %vm612_vm1, %v942_v14  ;;  %v952_v16 = vsel %vm2241_vm5, %v2163_v29, %v948_v22  ;;  %v968_v56 = vmul.f32 %v2178_v36, %v967_v24  ;;  %v986_v39 = vmul.f32 0.5, %v985_v26  ;;  %v994_v40 = vmul.f32 %v2196_v23, %v2130_v37 }
 0x166   : > { %1056 = vst.msk [vmem:[%s1506_s30 + $0xb8] sm:$0xff] %vm612_vm1, %v952_v16  ;;  %v962_v28 = vsel %vm2255_vm7, %v2171_v48, %v958_v30  ;;  %v978_v43 = vmul.f32 %v2184_v55, %v977_v34  ;;  %v1004_v33 = vmul.f32 %v2208_v4, %v2143_v35  ;;  %vm2439_vm10 = vweird.f32 %v2126_v32 }
 0x167   : > { %1057 = vst.msk [vmem:[%s1506_s30 + $0xc0] sm:$0xff] %vm612_vm1, %v962_v28  ;;  %v972_v42 = vsel %vm2270_vm4, %v2178_v36, %v968_v56  ;;  %v987_v29 = vsub.f32 1.5, %v986_v39  ;;  %v995_v47 = vmul.f32 %v2196_v23, %v994_v40  ;;  %vm2314_vm9 = vmor %vm2439_vm10, %vm990_vm3  ;;  %vm999_vm11 = vweird.f32 %v2130_v37 }
 0x168   : > { %1058 = vst.msk [vmem:[%s1506_s30 + $0xc8] sm:$0xff] %vm612_vm1, %v972_v42  ;;  %v982_v18 = vsel %vm2285_vm8, %v2184_v55, %v978_v43  ;;  %v1005_v49 = vmul.f32 %v2208_v4, %v1004_v33  ;;  %v1014_v50 = vmul.f32 %v2220_v7, %v2153_v38  ;;  %vm1000_vm12 = vweird.f32 %v2196_v23 }
 0x169   : > { %1059 = vst.msk [vmem:[%s1506_s30 + $0xd0] sm:$0xff] %vm612_vm1, %v982_v18  ;;  %v988_v36 = vmul.f32 %v2191_v59, %v987_v29  ;;  %v996_v52 = vmul.f32 0.5, %v995_v47  ;;  %v712_v32 = vadd.f32 1.0, %v680_v44  ;;  %vm1009_vm13 = vweird.f32 %v2143_v35  ;;  %vm1001_vm15 = vmor %vm999_vm11, %vm1000_vm12 }
 0x16a   : > { %v1006_v53 = vmul.f32 0.5, %v1005_v49  ;;  %vm1010_vm14 = vweird.f32 %v2208_v4  ;;  %v1015_v54 = vmul.f32 %v2220_v7, %v1014_v50  ;;  %vm1019_vm0 = vweird.f32 %v2153_v38 }
 0x16b   : > { %v992_v55 = vsel %vm2314_vm9, %v2191_v59, %v988_v36  ;;  %v997_v41 = vsub.f32 1.5, %v996_v52  ;;  %1302 = vrsqrt.f32 %v712_v32  ;;  %vm1020_vm2 = vweird.f32 %v2220_v7  ;;  %vm1011_vm5 = vmor %vm1009_vm13, %vm1010_vm14 }
 0x16c   : > { %1060 = vst.msk [vmem:[%s1506_s30 + $0xd8] sm:$0xff] %vm612_vm1, %v992_v55  ;;  %v1007_v57 = vsub.f32 1.5, %v1006_v53  ;;  %v1016_v58 = vmul.f32 0.5, %v1015_v54  ;;  %vm1021_vm7 = vmor %vm1019_vm0, %vm1020_vm2  ;;  %vm1029_vm4 = vweird.f32 %v712_v32 }
 0x16d   : > { %v998_v35 = vmul.f32 %v2196_v23, %v997_v41 }
 0x16e   : > { %v1008_v59 = vmul.f32 %v2208_v4, %v1007_v57  ;;  %v1017_v20 = vsub.f32 1.5, %v1016_v58 }
 0x16f   : > { %v1002_v45 = vsel %vm1001_vm15, %v2196_v23, %v998_v35 }
 0x170   : > { %1061 = vst.msk [vmem:[%s1506_s30 + $0xe0] sm:$0xff] %vm612_vm1, %v1002_v45  ;;  %v1012_v37 = vsel %vm1011_vm5, %v2208_v4, %v1008_v59  ;;  %v1018_v63 = vmul.f32 %v2220_v7, %v1017_v20 }
 0x171   : > { %v1303_v0 = vpop.eup %1302  ;;  %1062 = vst.msk [vmem:[%s1506_s30 + $0xe8] sm:$0xff] %vm612_vm1, %v1012_v37 }
 0x172   : > { %v1022_v38 = vsel %vm1021_vm7, %v2220_v7, %v1018_v63  ;;  %v1024_v1 = vmul.f32 %v1303_v0, %v712_v32  ;;  %vm1030_vm3 = vweird.f32 %v1303_v0 }
 0x173   : > { %1063 = vst.msk [vmem:[%s1506_s30 + $0xf0] sm:$0xff] %vm612_vm1, %v1022_v38  ;;  %vm1031_vm6 = vmor %vm1029_vm4, %vm1030_vm3 }
 0x174   : > { %v1025_v2 = vmul.f32 %v1303_v0, %v1024_v1 }
 0x176   : > { %v1026_v46 = vmul.f32 0.5, %v1025_v2 }
 0x178   : > { %v1027_v23 = vsub.f32 1.5, %v1026_v46 }
 0x17a   : > { %v1028_v3 = vmul.f32 %v1303_v0, %v1027_v23 }
 0x17c   : > { %v1032_v51 = vsel %vm1031_vm6, %v1303_v0, %v1028_v3 }
 0x17d   : > { %1064 = vst.msk [vmem:[%s1506_s30 + $0xf8] sm:$0xff] %vm612_vm1, %v1032_v51 }
 0x17e PF: > { %s14_s13 = sadd.s32 1, %s1400_s13   ;;  %s2442_s6 = smov %s1376_s7 }
 0x17f   : > { %p11_p3 = scmp.ge.s32.totalorder %s14_s13, 10   ;;  %s2443_s7 = smov %s1380_s8 }
 0x180   : > { %s2444_s8 = smov %s1483_s26  ;;  %s2445_s9 = smov %s1392_s11 }
 0x181   : > { %s2446_s10 = smov %s1396_s12  ;;  %s2447_s11 = smov %s2450_s15 }
 0x182   : > { %s2448_s12 = smov %s2454_s16  ;;  %13 = sbr.rel (!%p11_p3) target bundleno = 5 (0x5), region = 72 }
 0x187   :  { %1087 = vsyncpa [#allocation4], 1 }
 0x188   :  { %1089 = vsyncpa [#allocation4 + $0x1], 1 }

</bundles_post_ra>
